<compile_context>
chip_gen: v7x
topology: tpu7x:2x2x1
jax: 0.10.0
libtpu: 0.0.40
codegen_flags: <defaults>
</compile_context>

<pallas_src>
import jax
import jax.numpy as jnp
from jax.experimental import pallas as pl
from jax.experimental.pallas import tpu as pltpu


def _make_sppf_kernel(H, W, Nb):
    HW = H * W

    def silu(v):
        # sigmoid(v) = 0.5*(1 + tanh(0.5*v)): one EUP op, exact (no approx
        # reciprocal error).
        return v * (0.5 + 0.5 * jnp.tanh(0.5 * v))

    def kernel(x_ref, w1_ref, b1_ref, w2_ref, b2_ref, mk_ref, o_ref):
        # Additive 0/-inf boundary masks, one [1, HW] row per (direction,
        # offset); they broadcast across sublanes for free inside maximum().
        mk = mk_ref[...]                      # [8, HW] f32
        wfwd = (mk[0:1, :], mk[1:2, :])       # w + 1, w + 2 valid
        wbwd = (mk[2:3, :], mk[3:4, :])       # w - 1, w - 2 valid
        hfwd = (mk[4:5, :], mk[5:6, :])       # h + 1, h + 2 valid
        hbwd = (mk[6:7, :], mk[7:8, :])       # h - 1, h - 2 valid

        def maxpool5(a):
            # 5x5 / stride-1 / pad-2(-inf) max pool on a [Cm, HW] slab as a
            # separable 5-tap max.  Shifts are static lane rolls (XLU slot);
            # boundary handling is "+ additive mask" (VPU), so the whole pool
            # costs 8 rolls + 8 adds + 8 maxes per slab.
            r = a
            for i, d in enumerate((1, 2)):
                r = jnp.maximum(r, pltpu.roll(a, shift=HW - d, axis=1) + wfwd[i])
                r = jnp.maximum(r, pltpu.roll(a, shift=d, axis=1) + wbwd[i])
            out = r
            for i, d in enumerate((1, 2)):
                out = jnp.maximum(out, pltpu.roll(r, shift=HW - d * W, axis=1) + hfwd[i])
                out = jnp.maximum(out, pltpu.roll(r, shift=d * W, axis=1) + hbwd[i])
            return out

        w1 = w1_ref[...]                      # [Cm, C1]   (BN scale folded)
        b1 = b1_ref[...]                      # [Cm, 1]    f32
        w2 = w2_ref[...]                      # [C2, 4*Cm] (BN scale folded)
        b2 = b2_ref[...]                      # [C2, 1]    f32

        # Static unrolled loop over the Nb images of this grid step.
        for b in range(Nb):
            x = x_ref[b]                      # [C1, HW]

            # cv1: 1x1 conv (channel matmul, bf16 MXU, f32 acc) + bias + SiLU.
            y = jnp.dot(w1, x, preferred_element_type=jnp.float32) + b1
            y = silu(y)                       # [Cm, HW] f32

            # Three chained 5x5 max pools (in-register, f32).
            y1 = maxpool5(y)
            y2 = maxpool5(y1)
            y3 = maxpool5(y2)

            # cv2: one stacked matmul over the channel concat.  Materializing
            # the [4*Cm, HW] concat is far cheaper than 4 split dots + adds.
            ycat = jnp.concatenate([y, y1, y2, y3], axis=0).astype(w2.dtype)
            z = jnp.dot(w2, ycat, preferred_element_type=jnp.float32) + b2
            o_ref[b] = silu(z)                # [C2, HW] lane-dense store

    return kernel


def sppf_pallas(x_nchw, w1, s1, b1, w2, s2, b2, *, images_per_step=None,
                use_bf16_mxu=True):
    """SPPF forward. x_nchw: [N, C1, H, W] -> [N, C2, H, W] (f32 out)."""
    N, C1, H, W = x_nchw.shape
    Cm = w1.shape[1]
    C2 = w2.shape[1]
    HW = H * W

    mxu_dtype = jnp.bfloat16 if use_bf16_mxu else jnp.float32

    # Images per grid step: amortize per-step pipeline overhead while keeping
    # the per-step VMEM footprint small.  Largest divisor of N under a cap.
    if images_per_step is None:
        cap = max(1, 4096 // HW)
        nb = 1
        for d in range(1, N + 1):
            if N % d == 0 and d <= cap:
                nb = d
    else:
        nb = images_per_step
    assert N % nb == 0, "images_per_step must divide the batch"

    # Channel-major / spatial-minor: free reshape (NCHW already contiguous).
    # bf16 input halves the HBM input DMA bytes; MXU accumulates in f32.
    x_flat = x_nchw.reshape(N, C1, HW).astype(mxu_dtype)

    # Fold the BatchNorm scales directly into the conv weights (done once at
    # trace time) -> only the bias add remains in-kernel.
    w1s = (s1[:, None] * jnp.transpose(w1)).astype(mxu_dtype)        # [Cm, C1]
    w2s = (s2[:, None] * jnp.transpose(w2)).astype(mxu_dtype)        # [C2, 4*Cm]
    b1c = b1.reshape(Cm, 1).astype(jnp.float32)
    b2c = b2.reshape(C2, 1).astype(jnp.float32)

    # Precompute the 8 pool boundary masks as additive 0/-inf rows [8, HW]
    # (w+1, w+2, w-1, w-2, h+1, h+2, h-1, h-2 validity).  These also stop the
    # circular lane rolls from leaking across image boundaries when several
    # images share a grid step.
    col = jnp.arange(HW, dtype=jnp.int32)
    wq = col % W
    hq = col // W

    def amask(cond):
        return jnp.where(cond, 0.0, -jnp.inf).astype(jnp.float32)

    masks = jnp.stack([
        amask(wq < W - 1), amask(wq < W - 2),
        amask(wq >= 1), amask(wq >= 2),
        amask(hq < H - 1), amask(hq < H - 2),
        amask(hq >= 1), amask(hq >= 2),
    ], axis=0)                                                        # [8, HW]

    kernel = _make_sppf_kernel(H, W, nb)

    out_flat = pl.pallas_call(
        kernel,
        out_shape=jax.ShapeDtypeStruct((N, C2, HW), jnp.float32),
        grid_spec=pltpu.PrefetchScalarGridSpec(
            num_scalar_prefetch=0,
            grid=(N // nb,),
            in_specs=[
                pl.BlockSpec((nb, C1, HW), lambda n: (n, 0, 0)),   # x
                pl.BlockSpec((Cm, C1), lambda n: (0, 0)),          # w1 (scaled)
                pl.BlockSpec((Cm, 1), lambda n: (0, 0)),           # b1
                pl.BlockSpec((C2, 4 * Cm), lambda n: (0, 0)),      # w2 (scaled)
                pl.BlockSpec((C2, 1), lambda n: (0, 0)),           # b2
                pl.BlockSpec((8, HW), lambda n: (0, 0)),           # masks
            ],
            out_specs=pl.BlockSpec((nb, C2, HW), lambda n: (n, 0, 0)),
        ),
        compiler_params=pltpu.CompilerParams(
            # Batch axis is independent -> shards across v7x's 2 TensorCores;
            # harmless on single-TC v5e/v6e.
            dimension_semantics=("parallel",)),
    )(x_flat, w1s, b1c, w2s, b2c, masks)

    return out_flat.reshape(N, C2, H, W)


def sppf_ref(x, w1, s1, b1, w2, s2, b2):
    """Pure-JAX reference (NCHW, f32), mirrors the PyTorch module (BN folded)."""
    def cbs(x, w, s, b):
        y = jnp.einsum('nchw,cd->ndhw', x, w)
        y = y * s[None, :, None, None] + b[None, :, None, None]
        return y * jax.nn.sigmoid(y)

    def mp(x):
        return jax.lax.reduce_window(
            x, -jnp.inf, jax.lax.max,
            (1, 1, 5, 5), (1, 1, 1, 1),
            ((0, 0), (0, 0), (2, 2), (2, 2)))

    y = cbs(x, w1, s1, b1)
    y1 = mp(y)
    y2 = mp(y1)
    y3 = mp(y2)
    cat = jnp.concatenate([y, y1, y2, y3], axis=1)
    return cbs(cat, w2, s2, b2)


if __name__ == "__main__":
    # SPPF(c1=8, c2=16, k=5); input x: [N=2, C1=8, H=16, W=16]
    N, C1, H, W = 2, 8, 16, 16
    Cm = C1 // 2
    C2 = 16
    eps = 1e-3  # BatchNorm2d eps=0.001

    key = jax.random.PRNGKey(0)
    ks = jax.random.split(key, 12)

    x = jax.random.normal(ks[0], (N, C1, H, W), jnp.float32)

    # cv1 parameters (conv weight [C1, Cm], BN folded to scale/bias)
    w1 = 0.2 * jax.random.normal(ks[1], (C1, Cm), jnp.float32)
    g1 = 1.0 + 0.1 * jax.random.normal(ks[2], (Cm,), jnp.float32)
    be1 = 0.1 * jax.random.normal(ks[3], (Cm,), jnp.float32)
    m1 = 0.1 * jax.random.normal(ks[4], (Cm,), jnp.float32)
    v1 = jax.random.uniform(ks[5], (Cm,), jnp.float32, 0.5, 1.5)
    s1 = g1 / jnp.sqrt(v1 + eps)
    b1 = be1 - m1 * s1

    # cv2 parameters (conv weight [4*Cm, C2], BN folded to scale/bias)
    w2 = 0.2 * jax.random.normal(ks[6], (4 * Cm, C2), jnp.float32)
    g2 = 1.0 + 0.1 * jax.random.normal(ks[7], (C2,), jnp.float32)
    be2 = 0.1 * jax.random.normal(ks[8], (C2,), jnp.float32)
    m2 = 0.1 * jax.random.normal(ks[9], (C2,), jnp.float32)
    v2 = jax.random.uniform(ks[10], (C2,), jnp.float32, 0.5, 1.5)
    s2 = g2 / jnp.sqrt(v2 + eps)
    b2 = be2 - m2 * s2

    out = sppf_pallas(x, w1, s1, b1, w2, s2, b2)
    out = jax.block_until_ready(out)

    ref = sppf_ref(x, w1, s1, b1, w2, s2, b2)
    assert out.shape == (N, C2, H, W)
    # Tolerance accounts for bf16 MXU operands (x / folded weights / concat);
    # with use_bf16_mxu=False the kernel matches the f32 reference to ~1e-5.
    assert jnp.allclose(out, ref, rtol=3e-2, atol=3e-2), "mismatch vs reference"

    print("KERNEL_OK")
</pallas_src>

<mosaic_0001>
module attributes {stable_mosaic.version = 11 : i64} {
  func.func @kernel(%arg0: i32, %arg1: memref<2x8x256xbf16, #tpu.memory_space<vmem>>, %arg2: memref<4x8xbf16, #tpu.memory_space<vmem>>, %arg3: memref<4x1xf32, #tpu.memory_space<vmem>>, %arg4: memref<16x16xbf16, #tpu.memory_space<vmem>>, %arg5: memref<16x1xf32, #tpu.memory_space<vmem>>, %arg6: memref<8x256xf32, #tpu.memory_space<vmem>>, %arg7: memref<2x16x256xf32, #tpu.memory_space<vmem>>) attributes {dimension_semantics = [#tpu.dimension_semantics<parallel>], iteration_bounds = array<i64: 1>, scalar_prefetch = 0 : i64, scratch_operands = 0 : i64, tpu.core_type = #tpu.core_type<tc>, window_params = [{transform_indices = @transform_0, window_bounds = array<i64: 2, 8, 256>}, {pipeline_mode = #tpu.pipeline_mode<synchronous>, transform_indices = @transform_1, window_bounds = array<i64: 4, 8>}, {pipeline_mode = #tpu.pipeline_mode<synchronous>, transform_indices = @transform_2, window_bounds = array<i64: 4, 1>}, {pipeline_mode = #tpu.pipeline_mode<synchronous>, transform_indices = @transform_3, window_bounds = array<i64: 16, 16>}, {pipeline_mode = #tpu.pipeline_mode<synchronous>, transform_indices = @transform_4, window_bounds = array<i64: 16, 1>}, {pipeline_mode = #tpu.pipeline_mode<synchronous>, transform_indices = @transform_5, window_bounds = array<i64: 8, 256>}, {transform_indices = @transform_6, window_bounds = array<i64: 2, 16, 256>}]} {
    %c0 = arith.constant 0 : index
    %c0_0 = arith.constant 0 : index
    %0 = vector.load %arg6[%c0, %c0_0] : memref<8x256xf32, #tpu.memory_space<vmem>>, vector<8x256xf32>
    %1 = vector.extract_strided_slice %0 {offsets = [0, 0], sizes = [1, 256], strides = [1, 1]} : vector<8x256xf32> to vector<1x256xf32>
    %2 = vector.extract_strided_slice %0 {offsets = [1, 0], sizes = [1, 256], strides = [1, 1]} : vector<8x256xf32> to vector<1x256xf32>
    %3 = vector.extract_strided_slice %0 {offsets = [2, 0], sizes = [1, 256], strides = [1, 1]} : vector<8x256xf32> to vector<1x256xf32>
    %4 = vector.extract_strided_slice %0 {offsets = [3, 0], sizes = [1, 256], strides = [1, 1]} : vector<8x256xf32> to vector<1x256xf32>
    %5 = vector.extract_strided_slice %0 {offsets = [4, 0], sizes = [1, 256], strides = [1, 1]} : vector<8x256xf32> to vector<1x256xf32>
    %6 = vector.extract_strided_slice %0 {offsets = [5, 0], sizes = [1, 256], strides = [1, 1]} : vector<8x256xf32> to vector<1x256xf32>
    %7 = vector.extract_strided_slice %0 {offsets = [6, 0], sizes = [1, 256], strides = [1, 1]} : vector<8x256xf32> to vector<1x256xf32>
    %8 = vector.extract_strided_slice %0 {offsets = [7, 0], sizes = [1, 256], strides = [1, 1]} : vector<8x256xf32> to vector<1x256xf32>
    %c0_1 = arith.constant 0 : index
    %c0_2 = arith.constant 0 : index
    %9 = vector.load %arg2[%c0_1, %c0_2] : memref<4x8xbf16, #tpu.memory_space<vmem>>, vector<4x8xbf16>
    %c0_3 = arith.constant 0 : index
    %c0_4 = arith.constant 0 : index
    %10 = vector.load %arg3[%c0_3, %c0_4] : memref<4x1xf32, #tpu.memory_space<vmem>>, vector<4x1xf32>
    %c0_5 = arith.constant 0 : index
    %c0_6 = arith.constant 0 : index
    %11 = vector.load %arg4[%c0_5, %c0_6] : memref<16x16xbf16, #tpu.memory_space<vmem>>, vector<16x16xbf16>
    %c0_7 = arith.constant 0 : index
    %c0_8 = arith.constant 0 : index
    %12 = vector.load %arg5[%c0_7, %c0_8] : memref<16x1xf32, #tpu.memory_space<vmem>>, vector<16x1xf32>
    %c0_9 = arith.constant 0 : index
    %c0_10 = arith.constant 0 : index
    %c0_11 = arith.constant 0 : index
    %13 = vector.load %arg1[%c0_9, %c0_10, %c0_11] : memref<2x8x256xbf16, #tpu.memory_space<vmem>>, vector<1x8x256xbf16>
    %14 = vector.shape_cast %13 : vector<1x8x256xbf16> to vector<8x256xbf16>
    %cst = arith.constant dense<0.000000e+00> : vector<4x256xf32>
    %15 = tpu.matmul %9, %14, %cst {dimension_numbers = #tpu.dot_dimension_numbers<[1], [0], [0], [1], [0, 0, 1, 1], [], []>} : vector<4x8xbf16>, vector<8x256xbf16>, vector<4x256xf32> -> vector<4x256xf32>
    %16 = vector.broadcast %10 : vector<4x1xf32> to vector<4x256xf32>
    %17 = arith.addf %15, %16 : vector<4x256xf32>
    %cst_12 = arith.constant 5.000000e-01 : f32
    %18 = vector.broadcast %cst_12 : f32 to vector<4x256xf32>
    %19 = arith.mulf %18, %17 : vector<4x256xf32>
    %20 = math.tanh %19 : vector<4x256xf32>
    %cst_13 = arith.constant 5.000000e-01 : f32
    %21 = vector.broadcast %cst_13 : f32 to vector<4x256xf32>
    %22 = arith.mulf %21, %20 : vector<4x256xf32>
    %cst_14 = arith.constant 5.000000e-01 : f32
    %23 = vector.broadcast %cst_14 : f32 to vector<4x256xf32>
    %24 = arith.addf %23, %22 : vector<4x256xf32>
    %25 = arith.mulf %17, %24 : vector<4x256xf32>
    %c255_i32 = arith.constant 255 : i32
    %26 = tpu.dynamic_rotate %25 by %c255_i32 dim 1 : vector<4x256xf32>, i32 -> vector<4x256xf32>
    %27 = vector.broadcast %1 : vector<1x256xf32> to vector<4x256xf32>
    %28 = arith.addf %26, %27 : vector<4x256xf32>
    %29 = arith.maximumf %25, %28 : vector<4x256xf32>
    %c1_i32 = arith.constant 1 : i32
    %30 = tpu.dynamic_rotate %25 by %c1_i32 dim 1 : vector<4x256xf32>, i32 -> vector<4x256xf32>
    %31 = vector.broadcast %3 : vector<1x256xf32> to vector<4x256xf32>
    %32 = arith.addf %30, %31 : vector<4x256xf32>
    %33 = arith.maximumf %29, %32 : vector<4x256xf32>
    %c254_i32 = arith.constant 254 : i32
    %34 = tpu.dynamic_rotate %25 by %c254_i32 dim 1 : vector<4x256xf32>, i32 -> vector<4x256xf32>
    %35 = vector.broadcast %2 : vector<1x256xf32> to vector<4x256xf32>
    %36 = arith.addf %34, %35 : vector<4x256xf32>
    %37 = arith.maximumf %33, %36 : vector<4x256xf32>
    %c2_i32 = arith.constant 2 : i32
    %38 = tpu.dynamic_rotate %25 by %c2_i32 dim 1 : vector<4x256xf32>, i32 -> vector<4x256xf32>
    %39 = vector.broadcast %4 : vector<1x256xf32> to vector<4x256xf32>
    %40 = arith.addf %38, %39 : vector<4x256xf32>
    %41 = arith.maximumf %37, %40 : vector<4x256xf32>
    %c240_i32 = arith.constant 240 : i32
    %42 = tpu.dynamic_rotate %41 by %c240_i32 dim 1 : vector<4x256xf32>, i32 -> vector<4x256xf32>
    %43 = vector.broadcast %5 : vector<1x256xf32> to vector<4x256xf32>
    %44 = arith.addf %42, %43 : vector<4x256xf32>
    %45 = arith.maximumf %41, %44 : vector<4x256xf32>
    %c16_i32 = arith.constant 16 : i32
    %46 = tpu.dynamic_rotate %41 by %c16_i32 dim 1 : vector<4x256xf32>, i32 -> vector<4x256xf32>
    %47 = vector.broadcast %7 : vector<1x256xf32> to vector<4x256xf32>
    %48 = arith.addf %46, %47 : vector<4x256xf32>
    %49 = arith.maximumf %45, %48 : vector<4x256xf32>
    %c224_i32 = arith.constant 224 : i32
    %50 = tpu.dynamic_rotate %41 by %c224_i32 dim 1 : vector<4x256xf32>, i32 -> vector<4x256xf32>
    %51 = vector.broadcast %6 : vector<1x256xf32> to vector<4x256xf32>
    %52 = arith.addf %50, %51 : vector<4x256xf32>
    %53 = arith.maximumf %49, %52 : vector<4x256xf32>
    %c32_i32 = arith.constant 32 : i32
    %54 = tpu.dynamic_rotate %41 by %c32_i32 dim 1 : vector<4x256xf32>, i32 -> vector<4x256xf32>
    %55 = vector.broadcast %8 : vector<1x256xf32> to vector<4x256xf32>
    %56 = arith.addf %54, %55 : vector<4x256xf32>
    %57 = arith.maximumf %53, %56 : vector<4x256xf32>
    %c255_i32_15 = arith.constant 255 : i32
    %58 = tpu.dynamic_rotate %57 by %c255_i32_15 dim 1 : vector<4x256xf32>, i32 -> vector<4x256xf32>
    %59 = vector.broadcast %1 : vector<1x256xf32> to vector<4x256xf32>
    %60 = arith.addf %58, %59 : vector<4x256xf32>
    %61 = arith.maximumf %57, %60 : vector<4x256xf32>
    %c1_i32_16 = arith.constant 1 : i32
    %62 = tpu.dynamic_rotate %57 by %c1_i32_16 dim 1 : vector<4x256xf32>, i32 -> vector<4x256xf32>
    %63 = vector.broadcast %3 : vector<1x256xf32> to vector<4x256xf32>
    %64 = arith.addf %62, %63 : vector<4x256xf32>
    %65 = arith.maximumf %61, %64 : vector<4x256xf32>
    %c254_i32_17 = arith.constant 254 : i32
    %66 = tpu.dynamic_rotate %57 by %c254_i32_17 dim 1 : vector<4x256xf32>, i32 -> vector<4x256xf32>
    %67 = vector.broadcast %2 : vector<1x256xf32> to vector<4x256xf32>
    %68 = arith.addf %66, %67 : vector<4x256xf32>
    %69 = arith.maximumf %65, %68 : vector<4x256xf32>
    %c2_i32_18 = arith.constant 2 : i32
    %70 = tpu.dynamic_rotate %57 by %c2_i32_18 dim 1 : vector<4x256xf32>, i32 -> vector<4x256xf32>
    %71 = vector.broadcast %4 : vector<1x256xf32> to vector<4x256xf32>
    %72 = arith.addf %70, %71 : vector<4x256xf32>
    %73 = arith.maximumf %69, %72 : vector<4x256xf32>
    %c240_i32_19 = arith.constant 240 : i32
    %74 = tpu.dynamic_rotate %73 by %c240_i32_19 dim 1 : vector<4x256xf32>, i32 -> vector<4x256xf32>
    %75 = vector.broadcast %5 : vector<1x256xf32> to vector<4x256xf32>
    %76 = arith.addf %74, %75 : vector<4x256xf32>
    %77 = arith.maximumf %73, %76 : vector<4x256xf32>
    %c16_i32_20 = arith.constant 16 : i32
    %78 = tpu.dynamic_rotate %73 by %c16_i32_20 dim 1 : vector<4x256xf32>, i32 -> vector<4x256xf32>
    %79 = vector.broadcast %7 : vector<1x256xf32> to vector<4x256xf32>
    %80 = arith.addf %78, %79 : vector<4x256xf32>
    %81 = arith.maximumf %77, %80 : vector<4x256xf32>
    %c224_i32_21 = arith.constant 224 : i32
    %82 = tpu.dynamic_rotate %73 by %c224_i32_21 dim 1 : vector<4x256xf32>, i32 -> vector<4x256xf32>
    %83 = vector.broadcast %6 : vector<1x256xf32> to vector<4x256xf32>
    %84 = arith.addf %82, %83 : vector<4x256xf32>
    %85 = arith.maximumf %81, %84 : vector<4x256xf32>
    %c32_i32_22 = arith.constant 32 : i32
    %86 = tpu.dynamic_rotate %73 by %c32_i32_22 dim 1 : vector<4x256xf32>, i32 -> vector<4x256xf32>
    %87 = vector.broadcast %8 : vector<1x256xf32> to vector<4x256xf32>
    %88 = arith.addf %86, %87 : vector<4x256xf32>
    %89 = arith.maximumf %85, %88 : vector<4x256xf32>
    %c255_i32_23 = arith.constant 255 : i32
    %90 = tpu.dynamic_rotate %89 by %c255_i32_23 dim 1 : vector<4x256xf32>, i32 -> vector<4x256xf32>
    %91 = vector.broadcast %1 : vector<1x256xf32> to vector<4x256xf32>
    %92 = arith.addf %90, %91 : vector<4x256xf32>
    %93 = arith.maximumf %89, %92 : vector<4x256xf32>
    %c1_i32_24 = arith.constant 1 : i32
    %94 = tpu.dynamic_rotate %89 by %c1_i32_24 dim 1 : vector<4x256xf32>, i32 -> vector<4x256xf32>
    %95 = vector.broadcast %3 : vector<1x256xf32> to vector<4x256xf32>
    %96 = arith.addf %94, %95 : vector<4x256xf32>
    %97 = arith.maximumf %93, %96 : vector<4x256xf32>
    %c254_i32_25 = arith.constant 254 : i32
    %98 = tpu.dynamic_rotate %89 by %c254_i32_25 dim 1 : vector<4x256xf32>, i32 -> vector<4x256xf32>
    %99 = vector.broadcast %2 : vector<1x256xf32> to vector<4x256xf32>
    %100 = arith.addf %98, %99 : vector<4x256xf32>
    %101 = arith.maximumf %97, %100 : vector<4x256xf32>
    %c2_i32_26 = arith.constant 2 : i32
    %102 = tpu.dynamic_rotate %89 by %c2_i32_26 dim 1 : vector<4x256xf32>, i32 -> vector<4x256xf32>
    %103 = vector.broadcast %4 : vector<1x256xf32> to vector<4x256xf32>
    %104 = arith.addf %102, %103 : vector<4x256xf32>
    %105 = arith.maximumf %101, %104 : vector<4x256xf32>
    %c240_i32_27 = arith.constant 240 : i32
    %106 = tpu.dynamic_rotate %105 by %c240_i32_27 dim 1 : vector<4x256xf32>, i32 -> vector<4x256xf32>
    %107 = vector.broadcast %5 : vector<1x256xf32> to vector<4x256xf32>
    %108 = arith.addf %106, %107 : vector<4x256xf32>
    %109 = arith.maximumf %105, %108 : vector<4x256xf32>
    %c16_i32_28 = arith.constant 16 : i32
    %110 = tpu.dynamic_rotate %105 by %c16_i32_28 dim 1 : vector<4x256xf32>, i32 -> vector<4x256xf32>
    %111 = vector.broadcast %7 : vector<1x256xf32> to vector<4x256xf32>
    %112 = arith.addf %110, %111 : vector<4x256xf32>
    %113 = arith.maximumf %109, %112 : vector<4x256xf32>
    %c224_i32_29 = arith.constant 224 : i32
    %114 = tpu.dynamic_rotate %105 by %c224_i32_29 dim 1 : vector<4x256xf32>, i32 -> vector<4x256xf32>
    %115 = vector.broadcast %6 : vector<1x256xf32> to vector<4x256xf32>
    %116 = arith.addf %114, %115 : vector<4x256xf32>
    %117 = arith.maximumf %113, %116 : vector<4x256xf32>
    %c32_i32_30 = arith.constant 32 : i32
    %118 = tpu.dynamic_rotate %105 by %c32_i32_30 dim 1 : vector<4x256xf32>, i32 -> vector<4x256xf32>
    %119 = vector.broadcast %8 : vector<1x256xf32> to vector<4x256xf32>
    %120 = arith.addf %118, %119 : vector<4x256xf32>
    %121 = arith.maximumf %117, %120 : vector<4x256xf32>
    %122 = tpu.concatenate %25, %57, %89, %121 in 0 : vector<4x256xf32>, vector<4x256xf32>, vector<4x256xf32>, vector<4x256xf32> -> vector<16x256xf32>
    %123 = arith.truncf %122 : vector<16x256xf32> to vector<16x256xbf16>
    %cst_31 = arith.constant dense<0.000000e+00> : vector<16x256xf32>
    %124 = tpu.matmul %11, %123, %cst_31 {dimension_numbers = #tpu.dot_dimension_numbers<[1], [0], [0], [1], [0, 0, 1, 1], [], []>} : vector<16x16xbf16>, vector<16x256xbf16>, vector<16x256xf32> -> vector<16x256xf32>
    %125 = vector.broadcast %12 : vector<16x1xf32> to vector<16x256xf32>
    %126 = arith.addf %124, %125 : vector<16x256xf32>
    %cst_32 = arith.constant 5.000000e-01 : f32
    %127 = vector.broadcast %cst_32 : f32 to vector<16x256xf32>
    %128 = arith.mulf %127, %126 : vector<16x256xf32>
    %129 = math.tanh %128 : vector<16x256xf32>
    %cst_33 = arith.constant 5.000000e-01 : f32
    %130 = vector.broadcast %cst_33 : f32 to vector<16x256xf32>
    %131 = arith.mulf %130, %129 : vector<16x256xf32>
    %cst_34 = arith.constant 5.000000e-01 : f32
    %132 = vector.broadcast %cst_34 : f32 to vector<16x256xf32>
    %133 = arith.addf %132, %131 : vector<16x256xf32>
    %134 = arith.mulf %126, %133 : vector<16x256xf32>
    %c0_35 = arith.constant 0 : index
    %c0_36 = arith.constant 0 : index
    %c0_37 = arith.constant 0 : index
    %135 = vector.load %arg7[%c0_35, %c0_36, %c0_37] : memref<2x16x256xf32, #tpu.memory_space<vmem>>, vector<1x16x256xf32>
    %136 = vector.shape_cast %135 : vector<1x16x256xf32> to vector<16x256xf32>
    %137 = vector.shape_cast %134 : vector<16x256xf32> to vector<1x16x256xf32>
    tpu.vector_store %arg7[%c0_35, %c0_36, %c0_37], %137 {strides = array<i32>} : memref<2x16x256xf32, #tpu.memory_space<vmem>>, vector<1x16x256xf32>,
    %c1 = arith.constant 1 : index
    %c0_38 = arith.constant 0 : index
    %c0_39 = arith.constant 0 : index
    %138 = vector.load %arg1[%c1, %c0_38, %c0_39] : memref<2x8x256xbf16, #tpu.memory_space<vmem>>, vector<1x8x256xbf16>
    %139 = vector.shape_cast %138 : vector<1x8x256xbf16> to vector<8x256xbf16>
    %cst_40 = arith.constant dense<0.000000e+00> : vector<4x256xf32>
    %140 = tpu.matmul %9, %139, %cst_40 {dimension_numbers = #tpu.dot_dimension_numbers<[1], [0], [0], [1], [0, 0, 1, 1], [], []>} : vector<4x8xbf16>, vector<8x256xbf16>, vector<4x256xf32> -> vector<4x256xf32>
    %141 = vector.broadcast %10 : vector<4x1xf32> to vector<4x256xf32>
    %142 = arith.addf %140, %141 : vector<4x256xf32>
    %cst_41 = arith.constant 5.000000e-01 : f32
    %143 = vector.broadcast %cst_41 : f32 to vector<4x256xf32>
    %144 = arith.mulf %143, %142 : vector<4x256xf32>
    %145 = math.tanh %144 : vector<4x256xf32>
    %cst_42 = arith.constant 5.000000e-01 : f32
    %146 = vector.broadcast %cst_42 : f32 to vector<4x256xf32>
    %147 = arith.mulf %146, %145 : vector<4x256xf32>
    %cst_43 = arith.constant 5.000000e-01 : f32
    %148 = vector.broadcast %cst_43 : f32 to vector<4x256xf32>
    %149 = arith.addf %148, %147 : vector<4x256xf32>
    %150 = arith.mulf %142, %149 : vector<4x256xf32>
    %c255_i32_44 = arith.constant 255 : i32
    %151 = tpu.dynamic_rotate %150 by %c255_i32_44 dim 1 : vector<4x256xf32>, i32 -> vector<4x256xf32>
    %152 = vector.broadcast %1 : vector<1x256xf32> to vector<4x256xf32>
    %153 = arith.addf %151, %152 : vector<4x256xf32>
    %154 = arith.maximumf %150, %153 : vector<4x256xf32>
    %c1_i32_45 = arith.constant 1 : i32
    %155 = tpu.dynamic_rotate %150 by %c1_i32_45 dim 1 : vector<4x256xf32>, i32 -> vector<4x256xf32>
    %156 = vector.broadcast %3 : vector<1x256xf32> to vector<4x256xf32>
    %157 = arith.addf %155, %156 : vector<4x256xf32>
    %158 = arith.maximumf %154, %157 : vector<4x256xf32>
    %c254_i32_46 = arith.constant 254 : i32
    %159 = tpu.dynamic_rotate %150 by %c254_i32_46 dim 1 : vector<4x256xf32>, i32 -> vector<4x256xf32>
    %160 = vector.broadcast %2 : vector<1x256xf32> to vector<4x256xf32>
    %161 = arith.addf %159, %160 : vector<4x256xf32>
    %162 = arith.maximumf %158, %161 : vector<4x256xf32>
    %c2_i32_47 = arith.constant 2 : i32
    %163 = tpu.dynamic_rotate %150 by %c2_i32_47 dim 1 : vector<4x256xf32>, i32 -> vector<4x256xf32>
    %164 = vector.broadcast %4 : vector<1x256xf32> to vector<4x256xf32>
    %165 = arith.addf %163, %164 : vector<4x256xf32>
    %166 = arith.maximumf %162, %165 : vector<4x256xf32>
    %c240_i32_48 = arith.constant 240 : i32
    %167 = tpu.dynamic_rotate %166 by %c240_i32_48 dim 1 : vector<4x256xf32>, i32 -> vector<4x256xf32>
    %168 = vector.broadcast %5 : vector<1x256xf32> to vector<4x256xf32>
    %169 = arith.addf %167, %168 : vector<4x256xf32>
    %170 = arith.maximumf %166, %169 : vector<4x256xf32>
    %c16_i32_49 = arith.constant 16 : i32
    %171 = tpu.dynamic_rotate %166 by %c16_i32_49 dim 1 : vector<4x256xf32>, i32 -> vector<4x256xf32>
    %172 = vector.broadcast %7 : vector<1x256xf32> to vector<4x256xf32>
    %173 = arith.addf %171, %172 : vector<4x256xf32>
    %174 = arith.maximumf %170, %173 : vector<4x256xf32>
    %c224_i32_50 = arith.constant 224 : i32
    %175 = tpu.dynamic_rotate %166 by %c224_i32_50 dim 1 : vector<4x256xf32>, i32 -> vector<4x256xf32>
    %176 = vector.broadcast %6 : vector<1x256xf32> to vector<4x256xf32>
    %177 = arith.addf %175, %176 : vector<4x256xf32>
    %178 = arith.maximumf %174, %177 : vector<4x256xf32>
    %c32_i32_51 = arith.constant 32 : i32
    %179 = tpu.dynamic_rotate %166 by %c32_i32_51 dim 1 : vector<4x256xf32>, i32 -> vector<4x256xf32>
    %180 = vector.broadcast %8 : vector<1x256xf32> to vector<4x256xf32>
    %181 = arith.addf %179, %180 : vector<4x256xf32>
    %182 = arith.maximumf %178, %181 : vector<4x256xf32>
    %c255_i32_52 = arith.constant 255 : i32
    %183 = tpu.dynamic_rotate %182 by %c255_i32_52 dim 1 : vector<4x256xf32>, i32 -> vector<4x256xf32>
    %184 = vector.broadcast %1 : vector<1x256xf32> to vector<4x256xf32>
    %185 = arith.addf %183, %184 : vector<4x256xf32>
    %186 = arith.maximumf %182, %185 : vector<4x256xf32>
    %c1_i32_53 = arith.constant 1 : i32
    %187 = tpu.dynamic_rotate %182 by %c1_i32_53 dim 1 : vector<4x256xf32>, i32 -> vector<4x256xf32>
    %188 = vector.broadcast %3 : vector<1x256xf32> to vector<4x256xf32>
    %189 = arith.addf %187, %188 : vector<4x256xf32>
    %190 = arith.maximumf %186, %189 : vector<4x256xf32>
    %c254_i32_54 = arith.constant 254 : i32
    %191 = tpu.dynamic_rotate %182 by %c254_i32_54 dim 1 : vector<4x256xf32>, i32 -> vector<4x256xf32>
    %192 = vector.broadcast %2 : vector<1x256xf32> to vector<4x256xf32>
    %193 = arith.addf %191, %192 : vector<4x256xf32>
    %194 = arith.maximumf %190, %193 : vector<4x256xf32>
    %c2_i32_55 = arith.constant 2 : i32
    %195 = tpu.dynamic_rotate %182 by %c2_i32_55 dim 1 : vector<4x256xf32>, i32 -> vector<4x256xf32>
    %196 = vector.broadcast %4 : vector<1x256xf32> to vector<4x256xf32>
    %197 = arith.addf %195, %196 : vector<4x256xf32>
    %198 = arith.maximumf %194, %197 : vector<4x256xf32>
    %c240_i32_56 = arith.constant 240 : i32
    %199 = tpu.dynamic_rotate %198 by %c240_i32_56 dim 1 : vector<4x256xf32>, i32 -> vector<4x256xf32>
    %200 = vector.broadcast %5 : vector<1x256xf32> to vector<4x256xf32>
    %201 = arith.addf %199, %200 : vector<4x256xf32>
    %202 = arith.maximumf %198, %201 : vector<4x256xf32>
    %c16_i32_57 = arith.constant 16 : i32
    %203 = tpu.dynamic_rotate %198 by %c16_i32_57 dim 1 : vector<4x256xf32>, i32 -> vector<4x256xf32>
    %204 = vector.broadcast %7 : vector<1x256xf32> to vector<4x256xf32>
    %205 = arith.addf %203, %204 : vector<4x256xf32>
    %206 = arith.maximumf %202, %205 : vector<4x256xf32>
    %c224_i32_58 = arith.constant 224 : i32
    %207 = tpu.dynamic_rotate %198 by %c224_i32_58 dim 1 : vector<4x256xf32>, i32 -> vector<4x256xf32>
    %208 = vector.broadcast %6 : vector<1x256xf32> to vector<4x256xf32>
    %209 = arith.addf %207, %208 : vector<4x256xf32>
    %210 = arith.maximumf %206, %209 : vector<4x256xf32>
    %c32_i32_59 = arith.constant 32 : i32
    %211 = tpu.dynamic_rotate %198 by %c32_i32_59 dim 1 : vector<4x256xf32>, i32 -> vector<4x256xf32>
    %212 = vector.broadcast %8 : vector<1x256xf32> to vector<4x256xf32>
    %213 = arith.addf %211, %212 : vector<4x256xf32>
    %214 = arith.maximumf %210, %213 : vector<4x256xf32>
    %c255_i32_60 = arith.constant 255 : i32
    %215 = tpu.dynamic_rotate %214 by %c255_i32_60 dim 1 : vector<4x256xf32>, i32 -> vector<4x256xf32>
    %216 = vector.broadcast %1 : vector<1x256xf32> to vector<4x256xf32>
    %217 = arith.addf %215, %216 : vector<4x256xf32>
    %218 = arith.maximumf %214, %217 : vector<4x256xf32>
    %c1_i32_61 = arith.constant 1 : i32
    %219 = tpu.dynamic_rotate %214 by %c1_i32_61 dim 1 : vector<4x256xf32>, i32 -> vector<4x256xf32>
    %220 = vector.broadcast %3 : vector<1x256xf32> to vector<4x256xf32>
    %221 = arith.addf %219, %220 : vector<4x256xf32>
    %222 = arith.maximumf %218, %221 : vector<4x256xf32>
    %c254_i32_62 = arith.constant 254 : i32
    %223 = tpu.dynamic_rotate %214 by %c254_i32_62 dim 1 : vector<4x256xf32>, i32 -> vector<4x256xf32>
    %224 = vector.broadcast %2 : vector<1x256xf32> to vector<4x256xf32>
    %225 = arith.addf %223, %224 : vector<4x256xf32>
    %226 = arith.maximumf %222, %225 : vector<4x256xf32>
    %c2_i32_63 = arith.constant 2 : i32
    %227 = tpu.dynamic_rotate %214 by %c2_i32_63 dim 1 : vector<4x256xf32>, i32 -> vector<4x256xf32>
    %228 = vector.broadcast %4 : vector<1x256xf32> to vector<4x256xf32>
    %229 = arith.addf %227, %228 : vector<4x256xf32>
    %230 = arith.maximumf %226, %229 : vector<4x256xf32>
    %c240_i32_64 = arith.constant 240 : i32
    %231 = tpu.dynamic_rotate %230 by %c240_i32_64 dim 1 : vector<4x256xf32>, i32 -> vector<4x256xf32>
    %232 = vector.broadcast %5 : vector<1x256xf32> to vector<4x256xf32>
    %233 = arith.addf %231, %232 : vector<4x256xf32>
    %234 = arith.maximumf %230, %233 : vector<4x256xf32>
    %c16_i32_65 = arith.constant 16 : i32
    %235 = tpu.dynamic_rotate %230 by %c16_i32_65 dim 1 : vector<4x256xf32>, i32 -> vector<4x256xf32>
    %236 = vector.broadcast %7 : vector<1x256xf32> to vector<4x256xf32>
    %237 = arith.addf %235, %236 : vector<4x256xf32>
    %238 = arith.maximumf %234, %237 : vector<4x256xf32>
    %c224_i32_66 = arith.constant 224 : i32
    %239 = tpu.dynamic_rotate %230 by %c224_i32_66 dim 1 : vector<4x256xf32>, i32 -> vector<4x256xf32>
    %240 = vector.broadcast %6 : vector<1x256xf32> to vector<4x256xf32>
    %241 = arith.addf %239, %240 : vector<4x256xf32>
    %242 = arith.maximumf %238, %241 : vector<4x256xf32>
    %c32_i32_67 = arith.constant 32 : i32
    %243 = tpu.dynamic_rotate %230 by %c32_i32_67 dim 1 : vector<4x256xf32>, i32 -> vector<4x256xf32>
    %244 = vector.broadcast %8 : vector<1x256xf32> to vector<4x256xf32>
    %245 = arith.addf %243, %244 : vector<4x256xf32>
    %246 = arith.maximumf %242, %245 : vector<4x256xf32>
    %247 = tpu.concatenate %150, %182, %214, %246 in 0 : vector<4x256xf32>, vector<4x256xf32>, vector<4x256xf32>, vector<4x256xf32> -> vector<16x256xf32>
    %248 = arith.truncf %247 : vector<16x256xf32> to vector<16x256xbf16>
    %cst_68 = arith.constant dense<0.000000e+00> : vector<16x256xf32>
    %249 = tpu.matmul %11, %248, %cst_68 {dimension_numbers = #tpu.dot_dimension_numbers<[1], [0], [0], [1], [0, 0, 1, 1], [], []>} : vector<16x16xbf16>, vector<16x256xbf16>, vector<16x256xf32> -> vector<16x256xf32>
    %250 = vector.broadcast %12 : vector<16x1xf32> to vector<16x256xf32>
    %251 = arith.addf %249, %250 : vector<16x256xf32>
    %cst_69 = arith.constant 5.000000e-01 : f32
    %252 = vector.broadcast %cst_69 : f32 to vector<16x256xf32>
    %253 = arith.mulf %252, %251 : vector<16x256xf32>
    %254 = math.tanh %253 : vector<16x256xf32>
    %cst_70 = arith.constant 5.000000e-01 : f32
    %255 = vector.broadcast %cst_70 : f32 to vector<16x256xf32>
    %256 = arith.mulf %255, %254 : vector<16x256xf32>
    %cst_71 = arith.constant 5.000000e-01 : f32
    %257 = vector.broadcast %cst_71 : f32 to vector<16x256xf32>
    %258 = arith.addf %257, %256 : vector<16x256xf32>
    %259 = arith.mulf %251, %258 : vector<16x256xf32>
    %c1_72 = arith.constant 1 : index
    %c0_73 = arith.constant 0 : index
    %c0_74 = arith.constant 0 : index
    %260 = vector.load %arg7[%c1_72, %c0_73, %c0_74] : memref<2x16x256xf32, #tpu.memory_space<vmem>>, vector<1x16x256xf32>
    %261 = vector.shape_cast %260 : vector<1x16x256xf32> to vector<16x256xf32>
    %262 = vector.shape_cast %259 : vector<16x256xf32> to vector<1x16x256xf32>
    tpu.vector_store %arg7[%c1_72, %c0_73, %c0_74], %262 {strides = array<i32>} : memref<2x16x256xf32, #tpu.memory_space<vmem>>, vector<1x16x256xf32>,
    return
  }
  func.func @transform_0(%arg0: i32) -> (i32, i32, i32) {
    %c0_i32 = arith.constant 0 : i32
    %c0_i32_0 = arith.constant 0 : i32
    %c0_i32_1 = arith.constant 0 : i32
    return %arg0, %c0_i32, %c0_i32_0 : i32, i32, i32
  }
  func.func @transform_1(%arg0: i32) -> (i32, i32) {
    %c0_i32 = arith.constant 0 : i32
    %c0_i32_0 = arith.constant 0 : i32
    %c0_i32_1 = arith.constant 0 : i32
    return %c0_i32, %c0_i32_0 : i32, i32
  }
  func.func @transform_2(%arg0: i32) -> (i32, i32) {
    %c0_i32 = arith.constant 0 : i32
    %c0_i32_0 = arith.constant 0 : i32
    %c0_i32_1 = arith.constant 0 : i32
    return %c0_i32, %c0_i32_0 : i32, i32
  }
  func.func @transform_3(%arg0: i32) -> (i32, i32) {
    %c0_i32 = arith.constant 0 : i32
    %c0_i32_0 = arith.constant 0 : i32
    %c0_i32_1 = arith.constant 0 : i32
    return %c0_i32, %c0_i32_0 : i32, i32
  }
  func.func @transform_4(%arg0: i32) -> (i32, i32) {
    %c0_i32 = arith.constant 0 : i32
    %c0_i32_0 = arith.constant 0 : i32
    %c0_i32_1 = arith.constant 0 : i32
    return %c0_i32, %c0_i32_0 : i32, i32
  }
  func.func @transform_5(%arg0: i32) -> (i32, i32) {
    %c0_i32 = arith.constant 0 : i32
    %c0_i32_0 = arith.constant 0 : i32
    %c0_i32_1 = arith.constant 0 : i32
    return %c0_i32, %c0_i32_0 : i32, i32
  }
  func.func @transform_6(%arg0: i32) -> (i32, i32, i32) {
    %c0_i32 = arith.constant 0 : i32
    %c0_i32_0 = arith.constant 0 : i32
    %c0_i32_1 = arith.constant 0 : i32
    return %arg0, %c0_i32, %c0_i32_0 : i32, i32, i32
  }
}

</mosaic_0001>

<bundles_post_ra>
// kernel: tpu_custom_call.1
= control target key start
LH: loop header
LB: loop body
LE: loop exit
PB: predicated region body
PF: predicated region fallthrough
CT: control target
= control target key end

     0   :  { %11 = vsyncpa [#allocation3], 0  ;;  %s1859_s0 = inlined_call_operand.vmem [shape: bf16[2,8,256], index: 0, kind: input, shape index: {}]   ;;  %s1860_s1 = inlined_call_operand.hbm [shape: bf16[4,8], index: 1, kind: input, shape index: {}]   ;;  %s1861_s2 = inlined_call_operand.vmem [shape: f32[4,1], index: 2, kind: input, shape index: {}]   ;;  %s1862_s3 = inlined_call_operand.hbm [shape: bf16[16,16], index: 3, kind: input, shape index: {}]   ;;  %s1863_s4 = inlined_call_operand.vmem [shape: f32[16,1], index: 4, kind: input, shape index: {}]   ;;  %s1864_s5 = inlined_call_operand.vmem [shape: f32[8,256], index: 5, kind: input, shape index: {}]   ;;  %s1865_s6 = inlined_call_operand.hbm [shape: f32[2,16,256], index: 6, kind: output, shape index: {}]  }
   0x1   :  { %12 = vsyncpa [#allocation6], 0 }
   0x2   :  { %13 = vsyncpa [#allocation4], 0  ;;  %s1088_s21 = smov [#allocation2]   ;;  %s1089_s23 = smov [#allocation5]  }
   0x3   :  { %s22_s22 = sshll.u32 %s1088_s21, 4  ;;  %s33_s24 = sshll.u32 %s1089_s23, 4  ;;  %s23_s22 = int_to_ptr.vmem [resolvable:$true] %s22_s22  ;;  %s1138_s24 = int_to_ptr.vmem [resolvable:$true] %s33_s24 }
   0x4   :  { %s1016_s27 = scalar_lea.hbm %s1860_s1, 32 }
   0x5   :  { %p1017_p0 = scmp.ne.s32.totalorder %s1860_s1, %s1016_s27  ;;  %p1020_p1 = scmp.lt.u32.totalorder %s1016_s27, %s1860_s1 }
   0x7   :  { %p1022_p2 = pnand %p1020_p1, %p1017_p0 }
   0x9   :  { %1025 = shalt.err (!%p1022_p2)
}
   0xa   :  { %s1026_s8 = scalar_lea.vmem %s23_s22, 32  ;;  %p1031_p4 = scmp.lt.s32.totalorder %s23_s22, %s23_s22 }
   0xb   :  { %p1027_p3 = scmp.ne.s32.totalorder %s23_s22, %s1026_s8  ;;  %p1032_p5 = scmp.lt.s32.totalorder %s1026_s8, %s1026_s8 }
   0xd   :  { %p1033_p6 = por %p1032_p5, %p1031_p4 }
   0xf   :  { %p1034_p7 = pnand %p1033_p6, %p1027_p3 }
  0x11   :  { %1037 = shalt.err (!%p1034_p7)
}
  0x12   :  { %25 = dma.hbm_to_vmem [thread:$0]  %s1860_s1, 32, %s23_s22, [#allocation3]  }
  0x13   :  { %s1038_s13 = scalar_lea.hbm %s1862_s3, 128 }
  0x14   :  { %p1039_p8 = scmp.ne.s32.totalorder %s1862_s3, %s1038_s13  ;;  %p1042_p9 = scmp.lt.u32.totalorder %s1038_s13, %s1862_s3 }
  0x16   :  { %p1044_p10 = pnand %p1042_p9, %p1039_p8 }
  0x18   :  { %1047 = shalt.err (!%p1044_p10)
}
  0x19   :  { %s1048_s18 = scalar_lea.vmem %s1138_s24, 128  ;;  %p1053_p12 = scmp.lt.s32.totalorder %s1138_s24, %s1138_s24 }
  0x1a   :  { %p1049_p11 = scmp.ne.s32.totalorder %s1138_s24, %s1048_s18  ;;  %p1054_p13 = scmp.lt.s32.totalorder %s1048_s18, %s1048_s18 }
  0x1c   :  { %p1055_p0 = por %p1054_p13, %p1053_p12 }
  0x1e   :  { %p1056_p1 = pnand %p1055_p0, %p1049_p11 }
  0x20   :  { %1059 = shalt.err (!%p1056_p1)
}
  0x21   :  { %s1090_s1 = smov 64   ;;  %s1091_s19 = smov 4  }
  0x22   :  { %39 = dma.hbm_to_vmem [thread:$0]  %s1862_s3, 128, %s1138_s24, [#allocation6], %s1090_s1, %s1090_s1, %s1091_s19  }
  0x23   :  { %1082 = dma.done.wait [#allocation3], 32  }
  0x24   :  { %1083 = vsyncadd [#allocation3], 4294967264 }
  0x25   :  { %1084 = dma.done.wait [#allocation6], 128  }
  0x26   :  { %1085 = vsyncadd [#allocation6], 4294967168  ;;  %v1092_v0 = vmov 0   ;;  %v59_v1 = vld [vmem:[%s1859_s0] sm:$0xff]  ;;  %vm74_vm0 = vcmask 1043456   ;;  %v964_v2 = vld [vmem:[%s1859_s0 + $0x8] sm:$0xff]  ;;  %v136_v46 = vlaneseq }
  0x27   :  { %113 = vmatprep.mubr.bf16.mxu0 %v1092_v0  ;;  %985 = vset.pattern.permute.xlu0 %v1092_v0  ;;  %v959_v3 = vcombine.high %v59_v1, %v59_v1  ;;  %v958_v4 = vcombine.low %v59_v1, %v59_v1  ;;  %v966_v5 = vcombine.high %v964_v2, %v964_v2  ;;  %v54_v7 = vld [vmem:[%s1861_s2] sm:$0xf]  ;;  %vm70_vm1 = vcmask 64512   ;;  %s1093_s0 = smov 1   ;;  %s1094_s2 = smov 127   ;;  %v1242_v57 = vld [vmem:[%s1864_s5 + $0x8] sm:$0xff] }
  0x28   :  { %515 = vmatprep.mubr.bf16.mxu1 %v1092_v0  ;;  %986 = vset.pattern.permute.xlu1 %v1092_v0  ;;  %v965_v6 = vcombine.low %v964_v2, %v964_v2  ;;  %v53_v9 = vld [vmem:[#allocation2] sm:$0x3]  ;;  %s1095_s27 = smov 126   ;;  %s1096_s28 = smov 2   ;;  %v1227_v48 = vshrl.u32 %v136_v46, 7  ;;  %v1229_v50 = vand.u32 127, %v136_v46 }
  0x29   :  { %62 = vperm.xlu0 %985, %v54_v7   ;;  %960 = vmatprep.subr.msk.bf16.mxu0 %vm74_vm0, %v959_v3  ;;  %v76_v8 = vsel %vm74_vm0, %v958_v4, 0  ;;  %v1237_v56 = vld [vmem:[%s1864_s5] sm:$0xff]  ;;  %s1097_s5 = smov 112   ;;  %s1098_s9 = smov 16   ;;  %vm479_vm10 = vcmask 130048  }
  0x2a   :  { %82 = vmatpush1.bf16.msra.mxu0 %v76_v8  ;;  %v558_v10 = vsel %vm74_vm0, %v965_v6, 0  ;;  %v143_v51 = vsub.s32 0, %v1227_v48  ;;  %v162_v52 = vsub.s32 2, %v1227_v48  ;;  %v181_v54 = vsub.s32 1, %v1227_v48  ;;  %s1099_s10 = smov 96   ;;  %s1100_s11 = smov 32  }
  0x2b   :  { %967 = vmatprep.subr.msk.bf16.mxu0 %vm74_vm0, %v966_v5  ;;  %vm157_vm2 = vcmp.lt.s32.totalorder %v1229_v50, 1  ;;  %vm138_vm3 = vcmp.lt.s32.totalorder %v1229_v50, 127  ;;  %v200_v60 = vsub.s32 3, %v1227_v48  ;;  %vm176_vm4 = vcmp.lt.s32.totalorder %v1229_v50, 126 }
  0x2c   :  { %v1247_v58 = vrot.slane %v1237_v56, %v143_v51  ;;  %v1250_v59 = vrot.slane %v1242_v57, %v143_v51  ;;  %v1254_v61 = vrot.slane %v1237_v56, %v162_v52  ;;  %v1257_v62 = vrot.slane %v1242_v57, %v162_v52 }
  0x2d   :  { %961 = vmatmul.mubr.msk.bf16.vlgmr.msra.gmra.mrb[0].mxu0 %vm70_vm1, %v53_v9  ;;  %v1261_v63 = vrot.slane %v1237_v56, %v181_v54  ;;  %v1272_v7 = vrot.slane %v1242_v57, %v181_v54  ;;  %vm195_vm5 = vcmp.lt.s32.totalorder %v1229_v50, 2  ;;  %vm214_vm6 = vcmp.lt.s32.totalorder %v1229_v50, 112 }
  0x2e   :  { %564 = vmatpush1.bf16.msra.mxu0 %v558_v10  ;;  %595 = vmatprep.mubr.bf16.mxu0 %v1092_v0  ;;  %vm233_vm7 = vcmp.lt.s32.totalorder %v1229_v50, 16  ;;  %vm252_vm8 = vcmp.lt.s32.totalorder %v1229_v50, 96  ;;  %vm271_vm9 = vcmp.lt.s32.totalorder %v1229_v50, 32 }
  0x35   :  { %968 = vmatmul.mubr.msk.bf16.vlgmr.msra.gmra.mrb[4].mxu0 %vm70_vm1, %v53_v9 }
  0xa8   :  { %v63_v11 = vpop.permute.xlu0 %62 }
 0x100   :  { %v115_v12 = vpop.f32.mrb[0].mxu0 }
 0x101   :  { %v116_v13 = vadd.f32 %v115_v12, %v63_v11  ;;  %v117_v14 = vpop.f32.mrb[1].mxu0  ;;  %v1282_v12 = vrot.slane %v1237_v56, %v200_v60 }
 0x102   :  { %v118_v15 = vadd.f32 %v117_v14, %v63_v11  ;;  %v119_v16 = vpop.f32.mrb[2].mxu0 }
 0x103   :  { %v122_v17 = vmul.f32 0.5, %v116_v13  ;;  %v120_v18 = vpop.f32.mrb[3].mxu0 }
 0x104   :  { %v123_v19 = vmul.f32 0.5, %v118_v15 }
 0x105   :  { %992 = vtanh.f32 %v122_v17 }
 0x106   :  { %994 = vtanh.f32 %v123_v19 }
 0x108   :  { %v597_v20 = vpop.f32.mrb[4].mxu0 }
 0x109   :  { %v598_v21 = vadd.f32 %v597_v20, %v63_v11  ;;  %v599_v22 = vpop.f32.mrb[5].mxu0 }
 0x10a   :  { %v600_v23 = vadd.f32 %v599_v22, %v63_v11  ;;  %v601_v24 = vpop.f32.mrb[6].mxu0 }
 0x10b   :  { %v604_v25 = vmul.f32 0.5, %v598_v21  ;;  %v602_v26 = vpop.f32.mrb[7].mxu0 }
 0x10c   :  { %v605_v27 = vmul.f32 0.5, %v600_v23 }
 0x10d   :  { %996 = vtanh.f32 %v604_v25 }
 0x10e   :  { %998 = vtanh.f32 %v605_v27 }
 0x10f   :  { %v993_v28 = vpop.eup %992 }
 0x110   :  { %v995_v29 = vpop.eup %994  ;;  %v126_v30 = vmul.f32 0.5, %v993_v28 }
 0x111   :  { %v127_v31 = vmul.f32 0.5, %v995_v29 }
 0x112   :  { %v128_v32 = vadd.f32 0.5, %v126_v30 }
 0x113   :  { %v129_v34 = vadd.f32 0.5, %v127_v31 }
 0x114   :  { %v1187_v33 = vmul.f32 %v128_v32, %v116_v13  ;;  %v1285_v13 = vrot.slane %v1242_v57, %v200_v60 }
 0x115   :  { %v1193_v36 = vmul.f32 %v129_v34, %v118_v15 }
 0x116   :  { %153 = vrot.lane.b32.xlu1 %v1187_v33, %s1093_s0  ;;  %132 = vrot.lane.b32.xlu0 %v1187_v33, %s1094_s2 }
 0x117   :  { %v997_v35 = vpop.eup %996 }
 0x118   :  { %v999_v37 = vpop.eup %998  ;;  %v608_v38 = vmul.f32 0.5, %v997_v35 }
 0x119   :  { %v609_v39 = vmul.f32 0.5, %v999_v37 }
 0x11a   :  { %172 = vrot.lane.b32.xlu1 %v1187_v33, %s1095_s27  ;;  %155 = vrot.lane.b32.xlu0 %v1193_v36, %s1093_s0  ;;  %v610_v40 = vadd.f32 0.5, %v608_v38 }
 0x11b   :  { %v611_v41 = vadd.f32 0.5, %v609_v39 }
 0x11c   :  { %v1207_v42 = vmul.f32 %v610_v40, %v598_v21 }
 0x11d   :  { %v1209_v43 = vmul.f32 %v611_v41, %v600_v23 }
 0x11e   :  { %191 = vrot.lane.b32.xlu1 %v1187_v33, %s1096_s28  ;;  %174 = vrot.lane.b32.xlu0 %v1193_v36, %s1095_s27 }
 0x122   :  { %134 = vrot.lane.b32.xlu1 %v1193_v36, %s1094_s2  ;;  %193 = vrot.lane.b32.xlu0 %v1193_v36, %s1096_s28 }
 0x126   :  { %614 = vrot.lane.b32.xlu1 %v1207_v42, %s1094_s2  ;;  %616 = vrot.lane.b32.xlu0 %v1209_v43, %s1094_s2 }
 0x12a   :  { %624 = vrot.lane.b32.xlu1 %v1207_v42, %s1093_s0  ;;  %626 = vrot.lane.b32.xlu0 %v1209_v43, %s1093_s0 }
 0x12e   :  { %634 = vrot.lane.b32.xlu1 %v1207_v42, %s1095_s27  ;;  %636 = vrot.lane.b32.xlu0 %v1209_v43, %s1095_s27 }
 0x132   :  { %644 = vrot.lane.b32.xlu1 %v1207_v42, %s1096_s28  ;;  %646 = vrot.lane.b32.xlu0 %v1209_v43, %s1096_s28 }
 0x188   :  { %v154_v44 = vpop.permute.xlu1 %153  ;;  %v133_v45 = vpop.permute.xlu0 %132 }
 0x18c   :  { %v173_v47 = vpop.permute.xlu1 %172  ;;  %v156_v49 = vpop.permute.xlu0 %155 }
 0x18d   :  { %v158_v3 = vsel %vm157_vm2, %v154_v44, %v156_v49  ;;  %v159_v4 = vsel %vm157_vm2, %v156_v49, %v154_v44 }
 0x18e   :  { %v168_v14 = vadd.f32 %v1254_v61, %v159_v4  ;;  %v169_v15 = vadd.f32 %v1257_v62, %v158_v3 }
 0x190   :  { %v192_v53 = vpop.permute.xlu1 %191  ;;  %v175_v55 = vpop.permute.xlu0 %174 }
 0x191   :  { %v177_v10 = vsel %vm176_vm4, %v173_v47, %v175_v55  ;;  %v178_v11 = vsel %vm176_vm4, %v175_v55, %v173_v47 }
 0x192   :  { %v187_v22 = vadd.f32 %v1261_v63, %v177_v10  ;;  %v188_v23 = vadd.f32 %v1272_v7, %v178_v11 }
 0x194   :  { %v135_v1 = vpop.permute.xlu1 %134  ;;  %v194_v2 = vpop.permute.xlu0 %193 }
 0x195   :  { %v139_v5 = vsel %vm138_vm3, %v133_v45, %v135_v1  ;;  %v140_v6 = vsel %vm138_vm3, %v135_v1, %v133_v45  ;;  %v196_v20 = vsel %vm195_vm5, %v192_v53, %v194_v2  ;;  %v197_v21 = vsel %vm195_vm5, %v194_v2, %v192_v53 }
 0x196   :  { %v149_v8 = vadd.f32 %v1247_v58, %v139_v5  ;;  %v150_v9 = vadd.f32 %v1250_v59, %v140_v6  ;;  %v206_v28 = vadd.f32 %v1282_v12, %v197_v21  ;;  %v207_v29 = vadd.f32 %v1285_v13, %v196_v20 }
 0x197   :  { %v257_v21 = vsub.s32 5, %v1227_v48 }
 0x198   :  { %v151_v16 = vmax.f32 %v1187_v33, %v149_v8  ;;  %v152_v17 = vmax.f32 %v1193_v36, %v150_v9  ;;  %v615_v18 = vpop.permute.xlu1 %614  ;;  %v617_v19 = vpop.permute.xlu0 %616 }
 0x199   :  { %v618_v35 = vsel %vm138_vm3, %v615_v18, %v617_v19  ;;  %v619_v39 = vsel %vm138_vm3, %v617_v19, %v615_v18  ;;  %v238_v18 = vsub.s32 6, %v1227_v48 }
 0x19a   :  { %v170_v24 = vmax.f32 %v151_v16, %v168_v14  ;;  %v171_v25 = vmax.f32 %v152_v17, %v169_v15  ;;  %v620_v40 = vadd.f32 %v618_v35, %v1247_v58  ;;  %v621_v45 = vadd.f32 %v619_v39, %v1250_v59 }
 0x19b   :  { %v219_v15 = vsub.s32 4, %v1227_v48 }
 0x19c   :  { %v189_v26 = vmax.f32 %v170_v24, %v187_v22  ;;  %v190_v27 = vmax.f32 %v171_v25, %v188_v23  ;;  %v625_v30 = vpop.permute.xlu1 %624  ;;  %v627_v31 = vpop.permute.xlu0 %626  ;;  %v622_v54 = vmax.f32 %v1207_v42, %v620_v40  ;;  %v623_v1 = vmax.f32 %v1209_v43, %v621_v45 }
 0x19d   :  { %v628_v41 = vsel %vm157_vm2, %v625_v30, %v627_v31  ;;  %v629_v44 = vsel %vm157_vm2, %v627_v31, %v625_v30  ;;  %v1369_v19 = vrot.slane %v1237_v56, %v219_v15  ;;  %v1372_v20 = vrot.slane %v1242_v57, %v219_v15 }
 0x19e   :  { %v1299_v32 = vmax.f32 %v189_v26, %v206_v28  ;;  %v1301_v34 = vmax.f32 %v190_v27, %v207_v29  ;;  %v630_v52 = vadd.f32 %v629_v44, %v1254_v61  ;;  %v631_v53 = vadd.f32 %v628_v41, %v1257_v62 }
 0x19f   :  { %v1381_v25 = vrot.slane %v1237_v56, %v238_v18  ;;  %v1384_v26 = vrot.slane %v1242_v57, %v238_v18  ;;  %v276_v30 = vsub.s32 7, %v1227_v48 }
 0x1a0   :  { %v635_v37 = vpop.permute.xlu1 %634  ;;  %v637_v38 = vpop.permute.xlu0 %636  ;;  %212 = vrot.lane.b32.xlu0 %v1301_v34, %s1097_s5  ;;  %210 = vrot.lane.b32.xlu1 %v1299_v32, %s1097_s5  ;;  %v632_v4 = vmax.f32 %v622_v54, %v630_v52  ;;  %v633_v5 = vmax.f32 %v623_v1, %v631_v53 }
 0x1a1   :  { %v638_v49 = vsel %vm176_vm4, %v635_v37, %v637_v38  ;;  %v639_v51 = vsel %vm176_vm4, %v637_v38, %v635_v37  ;;  %v1395_v37 = vrot.slane %v1237_v56, %v257_v21  ;;  %v1398_v38 = vrot.slane %v1242_v57, %v257_v21 }
 0x1a2   :  { %v640_v2 = vadd.f32 %v638_v49, %v1261_v63  ;;  %v641_v3 = vadd.f32 %v639_v51, %v1272_v7 }
 0x1a4   :  { %v645_v46 = vpop.permute.xlu1 %644  ;;  %v647_v47 = vpop.permute.xlu0 %646  ;;  %231 = vrot.lane.b32.xlu0 %v1301_v34, %s1098_s9  ;;  %229 = vrot.lane.b32.xlu1 %v1299_v32, %s1098_s9  ;;  %v642_v9 = vmax.f32 %v632_v4, %v640_v2  ;;  %v643_v10 = vmax.f32 %v633_v5, %v641_v3 }
 0x1a5   :  { %v648_v55 = vsel %vm195_vm5, %v645_v46, %v647_v47  ;;  %v649_v60 = vsel %vm195_vm5, %v647_v47, %v645_v46  ;;  %v1408_v46 = vrot.slane %v1237_v56, %v276_v30  ;;  %v1411_v47 = vrot.slane %v1242_v57, %v276_v30 }
 0x1a6   :  { %v650_v6 = vadd.f32 %v649_v60, %v1282_v12  ;;  %v651_v8 = vadd.f32 %v648_v55, %v1285_v13 }
 0x1a8   :  { %250 = vrot.lane.b32.xlu0 %v1301_v34, %s1099_s10  ;;  %248 = vrot.lane.b32.xlu1 %v1299_v32, %s1099_s10  ;;  %v1345_v11 = vmax.f32 %v642_v9, %v650_v6  ;;  %v1347_v14 = vmax.f32 %v643_v10, %v651_v8 }
 0x1ac   :  { %269 = vrot.lane.b32.xlu0 %v1301_v34, %s1100_s11  ;;  %267 = vrot.lane.b32.xlu1 %v1299_v32, %s1100_s11 }
 0x1b0   :  { %656 = vrot.lane.b32.xlu0 %v1347_v14, %s1097_s5  ;;  %654 = vrot.lane.b32.xlu1 %v1345_v11, %s1097_s5 }
 0x1b4   :  { %666 = vrot.lane.b32.xlu0 %v1347_v14, %s1098_s9  ;;  %664 = vrot.lane.b32.xlu1 %v1345_v11, %s1098_s9 }
 0x1b8   :  { %676 = vrot.lane.b32.xlu0 %v1347_v14, %s1099_s10  ;;  %674 = vrot.lane.b32.xlu1 %v1345_v11, %s1099_s10 }
 0x1bc   :  { %686 = vrot.lane.b32.xlu0 %v1347_v14, %s1100_s11  ;;  %684 = vrot.lane.b32.xlu1 %v1345_v11, %s1100_s11 }
 0x212   :  { %v213_v16 = vpop.permute.xlu0 %212  ;;  %v211_v17 = vpop.permute.xlu1 %210 }
 0x213   :  { %v215_v22 = vsel %vm214_vm6, %v211_v17, %v213_v16  ;;  %v216_v23 = vsel %vm214_vm6, %v213_v16, %v211_v17 }
 0x214   :  { %v225_v31 = vadd.f32 %v1369_v19, %v215_v22  ;;  %v226_v35 = vadd.f32 %v1372_v20, %v216_v23 }
 0x216   :  { %v232_v24 = vpop.permute.xlu0 %231  ;;  %v230_v27 = vpop.permute.xlu1 %229  ;;  %v227_v49 = vmax.f32 %v1299_v32, %v225_v31  ;;  %v228_v51 = vmax.f32 %v1301_v34, %v226_v35 }
 0x217   :  { %v234_v28 = vsel %vm233_vm7, %v230_v27, %v232_v24  ;;  %v235_v29 = vsel %vm233_vm7, %v232_v24, %v230_v27 }
 0x218   :  { %v244_v39 = vadd.f32 %v1381_v25, %v235_v29  ;;  %v245_v40 = vadd.f32 %v1384_v26, %v234_v28 }
 0x21a   :  { %v251_v41 = vpop.permute.xlu0 %250  ;;  %v249_v44 = vpop.permute.xlu1 %248  ;;  %v246_v54 = vmax.f32 %v227_v49, %v244_v39  ;;  %v247_v55 = vmax.f32 %v228_v51, %v245_v40 }
 0x21b   :  { %v253_v48 = vsel %vm252_vm8, %v249_v44, %v251_v41  ;;  %v254_v45 = vsel %vm252_vm8, %v251_v41, %v249_v44 }
 0x21c   :  { %v263_v52 = vadd.f32 %v1395_v37, %v253_v48  ;;  %v264_v53 = vadd.f32 %v1398_v38, %v254_v45 }
 0x21e   :  { %v270_v60 = vpop.permute.xlu0 %269  ;;  %v268_v1 = vpop.permute.xlu1 %267  ;;  %v265_v57 = vmax.f32 %v246_v54, %v263_v52  ;;  %v266_v3 = vmax.f32 %v247_v55, %v264_v53 }
 0x21f   :  { %v272_v2 = vsel %vm271_vm9, %v268_v1, %v270_v60  ;;  %v273_v56 = vsel %vm271_vm9, %v270_v60, %v268_v1 }
 0x220   :  { %v282_v32 = vadd.f32 %v1408_v46, %v273_v56  ;;  %v283_v34 = vadd.f32 %v1411_v47, %v272_v2 }
 0x222   :  { %v1423_v4 = vmax.f32 %v265_v57, %v282_v32  ;;  %v1425_v5 = vmax.f32 %v266_v3, %v283_v34  ;;  %v657_v6 = vpop.permute.xlu0 %656  ;;  %v655_v8 = vpop.permute.xlu1 %654 }
 0x223   :  { %v658_v9 = vsel %vm214_vm6, %v655_v8, %v657_v6  ;;  %v659_v10 = vsel %vm214_vm6, %v657_v6, %v655_v8 }
 0x224   :  { %286 = vrot.lane.b32.xlu1 %v1423_v4, %s1094_s2  ;;  %288 = vrot.lane.b32.xlu0 %v1425_v5, %s1094_s2  ;;  %v660_v17 = vadd.f32 %v658_v9, %v1369_v19  ;;  %v661_v22 = vadd.f32 %v659_v10, %v1372_v20 }
 0x226   :  { %v667_v15 = vpop.permute.xlu0 %666  ;;  %v665_v16 = vpop.permute.xlu1 %664  ;;  %v662_v29 = vmax.f32 %v1345_v11, %v660_v17  ;;  %v663_v35 = vmax.f32 %v1347_v14, %v661_v22 }
 0x227   :  { %v668_v18 = vsel %vm233_vm7, %v665_v16, %v667_v15  ;;  %v669_v21 = vsel %vm233_vm7, %v667_v15, %v665_v16 }
 0x228   :  { %296 = vrot.lane.b32.xlu1 %v1423_v4, %s1093_s0  ;;  %298 = vrot.lane.b32.xlu0 %v1425_v5, %s1093_s0  ;;  %v670_v23 = vadd.f32 %v669_v21, %v1381_v25  ;;  %v671_v24 = vadd.f32 %v668_v18, %v1384_v26 }
 0x22a   :  { %v677_v27 = vpop.permute.xlu0 %676  ;;  %v675_v28 = vpop.permute.xlu1 %674  ;;  %v672_v41 = vmax.f32 %v662_v29, %v670_v23  ;;  %v673_v11 = vmax.f32 %v663_v35, %v671_v24 }
 0x22b   :  { %v678_v30 = vsel %vm252_vm8, %v675_v28, %v677_v27  ;;  %v679_v31 = vsel %vm252_vm8, %v677_v27, %v675_v28 }
 0x22c   :  { %v680_v39 = vadd.f32 %v678_v30, %v1395_v37  ;;  %v681_v40 = vadd.f32 %v679_v31, %v1398_v38  ;;  %306 = vrot.lane.b32.xlu1 %v1423_v4, %s1095_s27  ;;  %308 = vrot.lane.b32.xlu0 %v1425_v5, %s1095_s27 }
 0x22e   :  { %v687_v44 = vpop.permute.xlu0 %686  ;;  %v685_v48 = vpop.permute.xlu1 %684  ;;  %v682_v45 = vmax.f32 %v672_v41, %v680_v39  ;;  %v683_v51 = vmax.f32 %v673_v11, %v681_v40 }
 0x22f   :  { %v688_v49 = vsel %vm271_vm9, %v685_v48, %v687_v44  ;;  %v689_v14 = vsel %vm271_vm9, %v687_v44, %v685_v48 }
 0x230   :  { %v690_v52 = vadd.f32 %v689_v14, %v1408_v46  ;;  %v691_v53 = vadd.f32 %v688_v49, %v1411_v47  ;;  %316 = vrot.lane.b32.xlu1 %v1423_v4, %s1096_s28  ;;  %318 = vrot.lane.b32.xlu0 %v1425_v5, %s1096_s28 }
 0x232   :  { %v1469_v54 = vmax.f32 %v682_v45, %v690_v52  ;;  %v1471_v55 = vmax.f32 %v683_v51, %v691_v53 }
 0x234   :  { %694 = vrot.lane.b32.xlu1 %v1469_v54, %s1094_s2  ;;  %696 = vrot.lane.b32.xlu0 %v1471_v55, %s1094_s2 }
 0x238   :  { %704 = vrot.lane.b32.xlu1 %v1469_v54, %s1093_s0  ;;  %706 = vrot.lane.b32.xlu0 %v1471_v55, %s1093_s0 }
 0x23c   :  { %714 = vrot.lane.b32.xlu1 %v1469_v54, %s1095_s27  ;;  %716 = vrot.lane.b32.xlu0 %v1471_v55, %s1095_s27 }
 0x240   :  { %724 = vrot.lane.b32.xlu1 %v1469_v54, %s1096_s28  ;;  %726 = vrot.lane.b32.xlu0 %v1471_v55, %s1096_s28 }
 0x296   :  { %v289_v60 = vpop.permute.xlu0 %288  ;;  %v287_v1 = vpop.permute.xlu1 %286 }
 0x297   :  { %v290_v2 = vsel %vm138_vm3, %v287_v1, %v289_v60  ;;  %v291_v56 = vsel %vm138_vm3, %v289_v60, %v287_v1 }
 0x298   :  { %v292_v6 = vadd.f32 %v290_v2, %v1247_v58  ;;  %v293_v8 = vadd.f32 %v291_v56, %v1250_v59 }
 0x29a   :  { %v299_v57 = vpop.permute.xlu0 %298  ;;  %v297_v3 = vpop.permute.xlu1 %296  ;;  %v294_v21 = vmax.f32 %v1423_v4, %v292_v6  ;;  %v295_v22 = vmax.f32 %v1425_v5, %v293_v8 }
 0x29b   :  { %v300_v32 = vsel %vm157_vm2, %v297_v3, %v299_v57  ;;  %v301_v34 = vsel %vm157_vm2, %v299_v57, %v297_v3 }
 0x29c   :  { %v302_v9 = vadd.f32 %v301_v34, %v1254_v61  ;;  %v303_v10 = vadd.f32 %v300_v32, %v1257_v62 }
 0x29e   :  { %v309_v15 = vpop.permute.xlu0 %308  ;;  %v307_v16 = vpop.permute.xlu1 %306  ;;  %v304_v27 = vmax.f32 %v294_v21, %v302_v9  ;;  %v305_v28 = vmax.f32 %v295_v22, %v303_v10 }
 0x29f   :  { %v310_v17 = vsel %vm176_vm4, %v307_v16, %v309_v15  ;;  %v311_v18 = vsel %vm176_vm4, %v309_v15, %v307_v16 }
 0x2a0   :  { %v312_v23 = vadd.f32 %v310_v17, %v1261_v63  ;;  %v313_v24 = vadd.f32 %v311_v18, %v1272_v7 }
 0x2a2   :  { %v319_v29 = vpop.permute.xlu0 %318  ;;  %v317_v30 = vpop.permute.xlu1 %316  ;;  %v314_v39 = vmax.f32 %v304_v27, %v312_v23  ;;  %v315_v40 = vmax.f32 %v305_v28, %v313_v24 }
 0x2a3   :  { %v320_v31 = vsel %vm195_vm5, %v317_v30, %v319_v29  ;;  %v321_v35 = vsel %vm195_vm5, %v319_v29, %v317_v30 }
 0x2a4   :  { %v322_v41 = vadd.f32 %v321_v35, %v1282_v12  ;;  %v323_v11 = vadd.f32 %v320_v31, %v1285_v13 }
 0x2a6   :  { %v1515_v44 = vmax.f32 %v314_v39, %v322_v41  ;;  %v1517_v48 = vmax.f32 %v315_v40, %v323_v11  ;;  %v697_v45 = vpop.permute.xlu0 %696  ;;  %v695_v49 = vpop.permute.xlu1 %694 }
 0x2a7   :  { %v698_v14 = vsel %vm138_vm3, %v695_v49, %v697_v45  ;;  %v699_v51 = vsel %vm138_vm3, %v697_v45, %v695_v49 }
 0x2a8   :  { %326 = vrot.lane.b32.xlu1 %v1515_v44, %s1097_s5  ;;  %328 = vrot.lane.b32.xlu0 %v1517_v48, %s1097_s5  ;;  %v700_v60 = vadd.f32 %v698_v14, %v1247_v58  ;;  %v701_v56 = vadd.f32 %v699_v51, %v1250_v59 }
 0x2aa   :  { %v707_v52 = vpop.permute.xlu0 %706  ;;  %v705_v53 = vpop.permute.xlu1 %704  ;;  %v702_v6 = vmax.f32 %v1469_v54, %v700_v60  ;;  %v703_v10 = vmax.f32 %v1471_v55, %v701_v56 }
 0x2ab   :  { %v708_v1 = vsel %vm157_vm2, %v705_v53, %v707_v52  ;;  %v709_v2 = vsel %vm157_vm2, %v707_v52, %v705_v53 }
 0x2ac   :  { %336 = vrot.lane.b32.xlu1 %v1515_v44, %s1098_s9  ;;  %338 = vrot.lane.b32.xlu0 %v1517_v48, %s1098_s9  ;;  %v710_v57 = vadd.f32 %v709_v2, %v1254_v61  ;;  %v711_v3 = vadd.f32 %v708_v1, %v1257_v62 }
 0x2ae   :  { %v717_v32 = vpop.permute.xlu0 %716  ;;  %v715_v34 = vpop.permute.xlu1 %714  ;;  %v712_v17 = vmax.f32 %v702_v6, %v710_v57  ;;  %v713_v18 = vmax.f32 %v703_v10, %v711_v3 }
 0x2af   :  { %v718_v8 = vsel %vm176_vm4, %v715_v34, %v717_v32  ;;  %v719_v9 = vsel %vm176_vm4, %v717_v32, %v715_v34 }
 0x2b0   :  { %v720_v15 = vadd.f32 %v718_v8, %v1261_v63  ;;  %v721_v16 = vadd.f32 %v719_v9, %v1272_v7  ;;  %346 = vrot.lane.b32.xlu1 %v1515_v44, %s1099_s10  ;;  %348 = vrot.lane.b32.xlu0 %v1517_v48, %s1099_s10 }
 0x2b2   :  { %v727_v21 = vpop.permute.xlu0 %726  ;;  %v725_v22 = vpop.permute.xlu1 %724  ;;  %v722_v23 = vmax.f32 %v712_v17, %v720_v15  ;;  %v723_v28 = vmax.f32 %v713_v18, %v721_v16 }
 0x2b3   :  { %v728_v24 = vsel %vm195_vm5, %v725_v22, %v727_v21  ;;  %v729_v27 = vsel %vm195_vm5, %v727_v21, %v725_v22 }
 0x2b4   :  { %v730_v29 = vadd.f32 %v729_v27, %v1282_v12  ;;  %v731_v30 = vadd.f32 %v728_v24, %v1285_v13  ;;  %356 = vrot.lane.b32.xlu1 %v1515_v44, %s1100_s11  ;;  %358 = vrot.lane.b32.xlu0 %v1517_v48, %s1100_s11 }
 0x2b6   :  { %v1561_v31 = vmax.f32 %v722_v23, %v730_v29  ;;  %v1563_v35 = vmax.f32 %v723_v28, %v731_v30 }
 0x2b8   :  { %734 = vrot.lane.b32.xlu1 %v1561_v31, %s1097_s5  ;;  %736 = vrot.lane.b32.xlu0 %v1563_v35, %s1097_s5 }
 0x2bc   :  { %744 = vrot.lane.b32.xlu1 %v1561_v31, %s1098_s9  ;;  %746 = vrot.lane.b32.xlu0 %v1563_v35, %s1098_s9 }
 0x2c0   :  { %754 = vrot.lane.b32.xlu1 %v1561_v31, %s1099_s10  ;;  %756 = vrot.lane.b32.xlu0 %v1563_v35, %s1099_s10 }
 0x2c4   :  { %764 = vrot.lane.b32.xlu1 %v1561_v31, %s1100_s11  ;;  %766 = vrot.lane.b32.xlu0 %v1563_v35, %s1100_s11 }
 0x31a   :  { %v329_v39 = vpop.permute.xlu0 %328  ;;  %v327_v40 = vpop.permute.xlu1 %326 }
 0x31b   :  { %v330_v41 = vsel %vm214_vm6, %v327_v40, %v329_v39  ;;  %v331_v11 = vsel %vm214_vm6, %v329_v39, %v327_v40 }
 0x31c   :  { %v332_v52 = vadd.f32 %v330_v41, %v1369_v19  ;;  %v333_v53 = vadd.f32 %v331_v11, %v1372_v20 }
 0x31e   :  { %v339_v45 = vpop.permute.xlu0 %338  ;;  %v337_v49 = vpop.permute.xlu1 %336  ;;  %v334_v32 = vmax.f32 %v1515_v44, %v332_v52  ;;  %v335_v34 = vmax.f32 %v1517_v48, %v333_v53 }
 0x31f   :  { %v340_v14 = vsel %vm233_vm7, %v337_v49, %v339_v45  ;;  %v341_v51 = vsel %vm233_vm7, %v339_v45, %v337_v49 }
 0x320   :  { %v342_v60 = vadd.f32 %v341_v51, %v1381_v25  ;;  %v343_v1 = vadd.f32 %v340_v14, %v1384_v26 }
 0x322   :  { %v349_v2 = vpop.permute.xlu0 %348  ;;  %v347_v56 = vpop.permute.xlu1 %346  ;;  %v344_v9 = vmax.f32 %v334_v32, %v342_v60  ;;  %v345_v10 = vmax.f32 %v335_v34, %v343_v1 }
 0x323   :  { %v350_v57 = vsel %vm252_vm8, %v347_v56, %v349_v2  ;;  %v351_v3 = vsel %vm252_vm8, %v349_v2, %v347_v56 }
 0x324   :  { %v352_v6 = vadd.f32 %v350_v57, %v1395_v37  ;;  %v353_v8 = vadd.f32 %v351_v3, %v1398_v38 }
 0x326   :  { %v359_v15 = vpop.permute.xlu0 %358  ;;  %v357_v16 = vpop.permute.xlu1 %356  ;;  %v354_v21 = vmax.f32 %v344_v9, %v352_v6  ;;  %v355_v22 = vmax.f32 %v345_v10, %v353_v8 }
 0x327   :  { %v360_v17 = vsel %vm271_vm9, %v357_v16, %v359_v15  ;;  %v361_v18 = vsel %vm271_vm9, %v359_v15, %v357_v16 }
 0x328   :  { %v362_v44 = vadd.f32 %v361_v18, %v1408_v46  ;;  %v363_v48 = vadd.f32 %v360_v17, %v1411_v47 }
 0x32a   :  { %v1607_v23 = vmax.f32 %v354_v21, %v362_v44  ;;  %v1609_v24 = vmax.f32 %v355_v22, %v363_v48  ;;  %v737_v27 = vpop.permute.xlu0 %736  ;;  %v735_v28 = vpop.permute.xlu1 %734 }
 0x32b   :  { %v738_v29 = vsel %vm214_vm6, %v735_v28, %v737_v27  ;;  %v739_v30 = vsel %vm214_vm6, %v737_v27, %v735_v28 }
 0x32c   :  { %366 = vrot.lane.b32.xlu1 %v1607_v23, %s1094_s2  ;;  %368 = vrot.lane.b32.xlu0 %v1609_v24, %s1094_s2  ;;  %v740_v41 = vadd.f32 %v738_v29, %v1369_v19  ;;  %v741_v49 = vadd.f32 %v739_v30, %v1372_v20 }
 0x32e   :  { %v747_v39 = vpop.permute.xlu0 %746  ;;  %v745_v40 = vpop.permute.xlu1 %744  ;;  %v742_v60 = vmax.f32 %v1561_v31, %v740_v41  ;;  %v743_v56 = vmax.f32 %v1563_v35, %v741_v49 }
 0x32f   :  { %v748_v11 = vsel %vm233_vm7, %v745_v40, %v747_v39  ;;  %v749_v45 = vsel %vm233_vm7, %v747_v39, %v745_v40 }
 0x330   :  { %376 = vrot.lane.b32.xlu1 %v1607_v23, %s1093_s0  ;;  %378 = vrot.lane.b32.xlu0 %v1609_v24, %s1093_s0  ;;  %v750_v14 = vadd.f32 %v749_v45, %v1381_v25  ;;  %v751_v51 = vadd.f32 %v748_v11, %v1384_v26 }
 0x332   :  { %v757_v52 = vpop.permute.xlu0 %756  ;;  %v755_v53 = vpop.permute.xlu1 %754  ;;  %v752_v32 = vmax.f32 %v742_v60, %v750_v14  ;;  %v753_v31 = vmax.f32 %v743_v56, %v751_v51 }
 0x333   :  { %v758_v1 = vsel %vm252_vm8, %v755_v53, %v757_v52  ;;  %v759_v2 = vsel %vm252_vm8, %v757_v52, %v755_v53 }
 0x334   :  { %v760_v57 = vadd.f32 %v758_v1, %v1395_v37  ;;  %v761_v3 = vadd.f32 %v759_v2, %v1398_v38  ;;  %386 = vrot.lane.b32.xlu1 %v1607_v23, %s1095_s27  ;;  %388 = vrot.lane.b32.xlu0 %v1609_v24, %s1095_s27 }
 0x336   :  { %v767_v34 = vpop.permute.xlu0 %766  ;;  %v765_v6 = vpop.permute.xlu1 %764  ;;  %v762_v8 = vmax.f32 %v752_v32, %v760_v57  ;;  %v763_v10 = vmax.f32 %v753_v31, %v761_v3 }
 0x337   :  { %v768_v9 = vsel %vm271_vm9, %v765_v6, %v767_v34  ;;  %v769_v35 = vsel %vm271_vm9, %v767_v34, %v765_v6 }
 0x338   :  { %v770_v15 = vadd.f32 %v769_v35, %v1408_v46  ;;  %v771_v16 = vadd.f32 %v768_v9, %v1411_v47  ;;  %396 = vrot.lane.b32.xlu1 %v1607_v23, %s1096_s28  ;;  %398 = vrot.lane.b32.xlu0 %v1609_v24, %s1096_s28 }
 0x33a   :  { %v1653_v17 = vmax.f32 %v762_v8, %v770_v15  ;;  %v1655_v18 = vmax.f32 %v763_v10, %v771_v16 }
 0x33c   :  { %774 = vrot.lane.b32.xlu1 %v1653_v17, %s1094_s2  ;;  %776 = vrot.lane.b32.xlu0 %v1655_v18, %s1094_s2 }
 0x340   :  { %784 = vrot.lane.b32.xlu1 %v1653_v17, %s1093_s0  ;;  %786 = vrot.lane.b32.xlu0 %v1655_v18, %s1093_s0 }
 0x344   :  { %794 = vrot.lane.b32.xlu1 %v1653_v17, %s1095_s27  ;;  %796 = vrot.lane.b32.xlu0 %v1655_v18, %s1095_s27 }
 0x348   :  { %804 = vrot.lane.b32.xlu1 %v1653_v17, %s1096_s28  ;;  %806 = vrot.lane.b32.xlu0 %v1655_v18, %s1096_s28 }
 0x39e   :  { %v369_v21 = vpop.permute.xlu0 %368  ;;  %v367_v22 = vpop.permute.xlu1 %366 }
 0x39f   :  { %v370_v44 = vsel %vm138_vm3, %v367_v22, %v369_v21  ;;  %v371_v48 = vsel %vm138_vm3, %v369_v21, %v367_v22 }
 0x3a0   :  { %v372_v39 = vadd.f32 %v370_v44, %v1247_v58  ;;  %v373_v40 = vadd.f32 %v371_v48, %v1250_v59 }
 0x3a2   :  { %v379_v27 = vpop.permute.xlu0 %378  ;;  %v377_v28 = vpop.permute.xlu1 %376  ;;  %v374_v52 = vmax.f32 %v1607_v23, %v372_v39  ;;  %v375_v53 = vmax.f32 %v1609_v24, %v373_v40 }
 0x3a3   :  { %v380_v29 = vsel %vm157_vm2, %v377_v28, %v379_v27  ;;  %v381_v30 = vsel %vm157_vm2, %v379_v27, %v377_v28 }
 0x3a4   :  { %v382_v41 = vadd.f32 %v381_v30, %v1254_v61  ;;  %v383_v11 = vadd.f32 %v380_v29, %v1257_v62 }
 0x3a6   :  { %v389_v45 = vpop.permute.xlu0 %388  ;;  %v387_v49 = vpop.permute.xlu1 %386  ;;  %v384_v2 = vmax.f32 %v374_v52, %v382_v41  ;;  %v385_v56 = vmax.f32 %v375_v53, %v383_v11 }
 0x3a7   :  { %v390_v14 = vsel %vm176_vm4, %v387_v49, %v389_v45  ;;  %v391_v51 = vsel %vm176_vm4, %v389_v45, %v387_v49 }
 0x3a8   :  { %v392_v60 = vadd.f32 %v390_v14, %v1261_v63  ;;  %v393_v1 = vadd.f32 %v391_v51, %v1272_v7 }
 0x3aa   :  { %v399_v57 = vpop.permute.xlu0 %398  ;;  %v397_v3 = vpop.permute.xlu1 %396  ;;  %v394_v34 = vmax.f32 %v384_v2, %v392_v60  ;;  %v395_v6 = vmax.f32 %v385_v56, %v393_v1 }
 0x3ab   :  { %v400_v32 = vsel %vm195_vm5, %v397_v3, %v399_v57  ;;  %v401_v31 = vsel %vm195_vm5, %v399_v57, %v397_v3 }
 0x3ac   :  { %v402_v8 = vadd.f32 %v401_v31, %v1282_v12  ;;  %v403_v9 = vadd.f32 %v400_v32, %v1285_v13 }
 0x3ae   :  { %v1699_v35 = vmax.f32 %v394_v34, %v402_v8  ;;  %v1701_v10 = vmax.f32 %v395_v6, %v403_v9  ;;  %v777_v15 = vpop.permute.xlu0 %776  ;;  %v775_v16 = vpop.permute.xlu1 %774 }
 0x3af   :  { %v778_v21 = vsel %vm138_vm3, %v775_v16, %v777_v15  ;;  %v779_v22 = vsel %vm138_vm3, %v777_v15, %v775_v16 }
 0x3b0   :  { %406 = vrot.lane.b32.xlu1 %v1699_v35, %s1097_s5  ;;  %408 = vrot.lane.b32.xlu0 %v1701_v10, %s1097_s5  ;;  %v780_v27 = vadd.f32 %v778_v21, %v1247_v58  ;;  %v781_v30 = vadd.f32 %v779_v22, %v1250_v59 }
 0x3b2   :  { %v787_v44 = vpop.permute.xlu0 %786  ;;  %v785_v48 = vpop.permute.xlu1 %784  ;;  %v782_v11 = vmax.f32 %v1653_v17, %v780_v27  ;;  %v783_v49 = vmax.f32 %v1655_v18, %v781_v30 }
 0x3b3   :  { %v788_v28 = vsel %vm157_vm2, %v785_v48, %v787_v44  ;;  %v789_v29 = vsel %vm157_vm2, %v787_v44, %v785_v48 }
 0x3b4   :  { %416 = vrot.lane.b32.xlu1 %v1699_v35, %s1098_s9  ;;  %418 = vrot.lane.b32.xlu0 %v1701_v10, %s1098_s9  ;;  %v790_v39 = vadd.f32 %v789_v29, %v1254_v61  ;;  %v791_v40 = vadd.f32 %v788_v28, %v1257_v62 }
 0x3b6   :  { %v797_v41 = vpop.permute.xlu0 %796  ;;  %v795_v58 = vpop.permute.xlu1 %794  ;;  %v792_v61 = vmax.f32 %v782_v11, %v790_v39  ;;  %v793_v62 = vmax.f32 %v783_v49, %v791_v40 }
 0x3b7   :  { %v798_v45 = vsel %vm176_vm4, %v795_v58, %v797_v41  ;;  %v799_v59 = vsel %vm176_vm4, %v797_v41, %v795_v58 }
 0x3b8   :  { %v800_v14 = vadd.f32 %v798_v45, %v1261_v63  ;;  %v801_v51 = vadd.f32 %v799_v59, %v1272_v7  ;;  %426 = vrot.lane.b32.xlu1 %v1699_v35, %s1099_s10  ;;  %428 = vrot.lane.b32.xlu0 %v1701_v10, %s1099_s10 }
 0x3ba   :  { %v807_v52 = vpop.permute.xlu0 %806  ;;  %v805_v53 = vpop.permute.xlu1 %804  ;;  %v802_v60 = vmax.f32 %v792_v61, %v800_v14  ;;  %v803_v63 = vmax.f32 %v793_v62, %v801_v51 }
 0x3bb   :  { %v808_v1 = vsel %vm195_vm5, %v805_v53, %v807_v52  ;;  %v809_v2 = vsel %vm195_vm5, %v807_v52, %v805_v53 }
 0x3bc   :  { %v810_v7 = vadd.f32 %v809_v2, %v1282_v12  ;;  %v811_v56 = vadd.f32 %v808_v1, %v1285_v13  ;;  %436 = vrot.lane.b32.xlu1 %v1699_v35, %s1100_s11  ;;  %438 = vrot.lane.b32.xlu0 %v1701_v10, %s1100_s11  ;;  %v58_v12 = vld [vmem:[%s1863_s4 + $0x8] sm:$0xff]  ;;  %v57_v13 = vld [vmem:[%s1863_s4] sm:$0xff]  ;;  %v449_v2 = vrot.slane %v1425_v5, 4  ;;  %s1101_s4 = smov [#allocation7]  }
 0x3bd   :  { %s945_s16 = sshll.u32 %s1101_s4, 4  ;;  %s946_s16 = int_to_ptr.vmem [resolvable:$true] %s945_s16 }
 0x3be   :  { %v1745_v57 = vmax.f32 %v802_v60, %v810_v7  ;;  %v1747_v3 = vmax.f32 %v803_v63, %v811_v56  ;;  %v448_v63 = vrot.slane %v1423_v4, 4  ;;  %s1060_s17 = scalar_lea.vmem %s946_s16, 1024  ;;  %p1065_p3 = scmp.lt.s32.totalorder %s946_s16, %s946_s16 }
 0x3bf   :  { %p1061_p2 = scmp.ne.s32.totalorder %s946_s16, %s1060_s17  ;;  %p1066_p4 = scmp.lt.s32.totalorder %s1060_s17, %s1060_s17 }
 0x3c0   :  { %814 = vrot.lane.b32.xlu1 %v1745_v57, %s1097_s5  ;;  %816 = vrot.lane.b32.xlu0 %v1747_v3, %s1097_s5  ;;  %v458_v5 = vsel %vm74_vm0, %v1187_v33, %v448_v63 }
 0x3c1   :  { %p1067_p5 = por %p1066_p4, %p1065_p3 }
 0x3c3   :  { %p1068_p6 = pnand %p1067_p5, %p1061_p2 }
 0x3c4   :  { %824 = vrot.lane.b32.xlu1 %v1745_v57, %s1098_s9  ;;  %826 = vrot.lane.b32.xlu0 %v1747_v3, %s1098_s9 }
 0x3c8   :  { %834 = vrot.lane.b32.xlu1 %v1745_v57, %s1099_s10  ;;  %836 = vrot.lane.b32.xlu0 %v1747_v3, %s1099_s10 }
 0x3cc   :  { %844 = vrot.lane.b32.xlu1 %v1745_v57, %s1100_s11  ;;  %846 = vrot.lane.b32.xlu0 %v1747_v3, %s1100_s11 }
 0x3d0   :  { %471 = vperm.xlu0 %985, %v58_v12   ;;  %466 = vperm.xlu1 %986, %v57_v13  }
 0x422   :  { %v409_v32 = vpop.permute.xlu0 %408  ;;  %v407_v31 = vpop.permute.xlu1 %406 }
 0x423   :  { %v410_v34 = vsel %vm214_vm6, %v407_v31, %v409_v32  ;;  %v411_v6 = vsel %vm214_vm6, %v409_v32, %v407_v31 }
 0x424   :  { %v412_v21 = vadd.f32 %v410_v34, %v1369_v19  ;;  %v413_v22 = vadd.f32 %v411_v6, %v1372_v20  ;;  %v459_v34 = vsel %vm74_vm0, %v1193_v36, %v449_v2 }
 0x426   :  { %v419_v8 = vpop.permute.xlu0 %418  ;;  %v417_v9 = vpop.permute.xlu1 %416  ;;  %v414_v39 = vmax.f32 %v1699_v35, %v412_v21  ;;  %v415_v40 = vmax.f32 %v1701_v10, %v413_v22 }
 0x427   :  { %v420_v15 = vsel %vm233_vm7, %v417_v9, %v419_v8  ;;  %v421_v16 = vsel %vm233_vm7, %v419_v8, %v417_v9 }
 0x428   :  { %v422_v44 = vadd.f32 %v421_v16, %v1381_v25  ;;  %v423_v48 = vadd.f32 %v420_v15, %v1384_v26 }
 0x42a   :  { %v429_v27 = vpop.permute.xlu0 %428  ;;  %v427_v28 = vpop.permute.xlu1 %426  ;;  %v424_v11 = vmax.f32 %v414_v39, %v422_v44  ;;  %v425_v45 = vmax.f32 %v415_v40, %v423_v48 }
 0x42b   :  { %v430_v29 = vsel %vm252_vm8, %v427_v28, %v429_v27  ;;  %v431_v30 = vsel %vm252_vm8, %v429_v27, %v427_v28 }
 0x42c   :  { %v432_v41 = vadd.f32 %v430_v29, %v1395_v37  ;;  %v433_v58 = vadd.f32 %v431_v30, %v1398_v38 }
 0x42e   :  { %v439_v59 = vpop.permute.xlu0 %438  ;;  %v437_v49 = vpop.permute.xlu1 %436  ;;  %v434_v61 = vmax.f32 %v424_v11, %v432_v41  ;;  %v435_v62 = vmax.f32 %v425_v45, %v433_v58  ;;  %v857_v45 = vrot.slane %v1471_v55, 4 }
 0x42f   :  { %v440_v14 = vsel %vm271_vm9, %v437_v49, %v439_v59  ;;  %v441_v51 = vsel %vm271_vm9, %v439_v59, %v437_v49  ;;  %v856_v59 = vrot.slane %v1469_v54, 4 }
 0x430   :  { %v442_v35 = vadd.f32 %v441_v51, %v1408_v46  ;;  %v443_v10 = vadd.f32 %v440_v14, %v1411_v47  ;;  %v867_v14 = vsel %vm74_vm0, %v1209_v43, %v857_v45 }
 0x431   :  { %v866_v51 = vsel %vm74_vm0, %v1207_v42, %v856_v59 }
 0x432   :  { %v444_v52 = vmax.f32 %v434_v61, %v442_v35  ;;  %v445_v53 = vmax.f32 %v435_v62, %v443_v10  ;;  %v817_v60 = vpop.permute.xlu0 %816  ;;  %v815_v1 = vpop.permute.xlu1 %814 }
 0x433   :  { %v818_v12 = vsel %vm214_vm6, %v815_v1, %v817_v60  ;;  %v819_v13 = vsel %vm214_vm6, %v817_v60, %v815_v1 }
 0x434   :  { %v454_v7 = vrot.slane %v444_v52, 4  ;;  %v455_v56 = vrot.slane %v445_v53, 4  ;;  %v820_v21 = vadd.f32 %v818_v12, %v1369_v19  ;;  %v821_v36 = vadd.f32 %v819_v13, %v1372_v20 }
 0x436   :  { %v827_v32 = vpop.permute.xlu0 %826  ;;  %v825_v31 = vpop.permute.xlu1 %824  ;;  %v461_v6 = vsel %vm74_vm0, %v1609_v24, %v455_v56  ;;  %v460_v4 = vsel %vm74_vm0, %v1607_v23, %v454_v7  ;;  %v991_v24 = vld [vmem:[#allocation5] sm:$0xff]   ;;  %v822_v19 = vmax.f32 %v1745_v57, %v820_v21  ;;  %v823_v20 = vmax.f32 %v1747_v3, %v821_v36 }
 0x437   :  { %v828_v8 = vsel %vm233_vm7, %v825_v31, %v827_v32  ;;  %v829_v9 = vsel %vm233_vm7, %v827_v32, %v825_v31  ;;  %v463_v15 = vpack.c.bf16 %v461_v6, %v459_v34  ;;  %v462_v16 = vpack.c.bf16 %v460_v4, %v458_v5 }
 0x438   :  { %v830_v22 = vadd.f32 %v829_v9, %v1381_v25  ;;  %v831_v33 = vadd.f32 %v828_v8, %v1384_v26 }
 0x439   :  { %483 = vmatprep.subr.bf16.mxu1 %v463_v15 }
 0x43a   :  { %v837_v44 = vpop.permute.xlu0 %836  ;;  %484 = vmatpush1.bf16.msra.mxu1 %v462_v16  ;;  %v835_v23 = vpop.permute.xlu1 %834  ;;  %v832_v26 = vmax.f32 %v822_v19, %v830_v22  ;;  %v833_v29 = vmax.f32 %v823_v20, %v831_v33 }
 0x43b   :  { %v838_v48 = vsel %vm252_vm8, %v835_v23, %v837_v44  ;;  %v839_v27 = vsel %vm252_vm8, %v837_v44, %v835_v23 }
 0x43c   :  { %v840_v28 = vadd.f32 %v838_v48, %v1395_v37  ;;  %v841_v25 = vadd.f32 %v839_v27, %v1398_v38 }
 0x43d   :  { %963 = vmatmul.mubr.msk.bf16.vlgmr.msra.gmra.mrb[0].mxu1 %vm479_vm10, %v991_v24 }
 0x43e   :  { %v847_v30 = vpop.permute.xlu0 %846  ;;  %v845_v39 = vpop.permute.xlu1 %844  ;;  %904 = vmatprep.mubr.bf16.mxu1 %v1092_v0  ;;  %v842_v41 = vmax.f32 %v832_v26, %v840_v28  ;;  %v843_v3 = vmax.f32 %v833_v29, %v841_v25 }
 0x43f   :  { %v848_v40 = vsel %vm271_vm9, %v845_v39, %v847_v30  ;;  %v849_v57 = vsel %vm271_vm9, %v847_v30, %v845_v39 }
 0x440   :  { %v850_v37 = vadd.f32 %v849_v57, %v1408_v46  ;;  %v851_v38 = vadd.f32 %v848_v40, %v1411_v47 }
 0x442   :  { %v852_v58 = vmax.f32 %v842_v41, %v850_v37  ;;  %v853_v11 = vmax.f32 %v843_v3, %v851_v38 }
 0x444   :  { %v862_v49 = vrot.slane %v852_v58, 4  ;;  %v863_v0 = vrot.slane %v853_v11, 4 }
 0x446   :  { %v869_v50 = vsel %vm74_vm0, %v1655_v18, %v863_v0  ;;  %v868_v46 = vsel %vm74_vm0, %v1653_v17, %v862_v49 }
 0x447   :  { %v871_v47 = vpack.c.bf16 %v869_v50, %v867_v14  ;;  %v870_v61 = vpack.c.bf16 %v868_v46, %v866_v51 }
 0x449   :  { %872 = vmatprep.subr.bf16.mxu1 %v871_v47 }
 0x44a   :  { %873 = vmatpush1.bf16.msra.mxu1 %v870_v61 }
 0x44d   :  { %969 = vmatmul.mubr.msk.bf16.vlgmr.msra.gmra.mrb[4].mxu1 %vm479_vm10, %v991_v24 }
 0x44f   :  { %v467_v54 = vpop.permute.xlu1 %466  ;;  %v472_v43 = vpop.permute.xlu0 %471 }
 0x510   :  { %v517_v55 = vpop.f32.mrb[0].mxu1 }
 0x511   :  { %v518_v62 = vadd.f32 %v517_v55, %v467_v54  ;;  %v519_v35 = vpop.f32.mrb[1].mxu1 }
 0x512   :  { %v520_v10 = vadd.f32 %v519_v35, %v467_v54  ;;  %v521_v52 = vpop.f32.mrb[2].mxu1 }
 0x513   :  { %v526_v18 = vmul.f32 0.5, %v518_v62  ;;  %v522_v53 = vadd.f32 %v521_v52, %v472_v43  ;;  %v523_v60 = vpop.f32.mrb[3].mxu1 }
 0x514   :  { %v527_v42 = vmul.f32 0.5, %v520_v10  ;;  %v524_v1 = vadd.f32 %v523_v60, %v472_v43 }
 0x515   :  { %1000 = vtanh.f32 %v526_v18  ;;  %v528_v17 = vmul.f32 0.5, %v522_v53 }
 0x516   :  { %1002 = vtanh.f32 %v527_v42  ;;  %v529_v2 = vmul.f32 0.5, %v524_v1 }
 0x517   :  { %1004 = vtanh.f32 %v528_v17 }
 0x518   :  { %1006 = vtanh.f32 %v529_v2 }
 0x51f   :  { %v1001_v63 = vpop.eup %1000 }
 0x520   :  { %v1003_v7 = vpop.eup %1002  ;;  %v534_v56 = vmul.f32 0.5, %v1001_v63  ;;  %v906_v12 = vpop.f32.mrb[4].mxu1 }
 0x521   :  { %v1005_v13 = vpop.eup %1004  ;;  %v535_v32 = vmul.f32 0.5, %v1003_v7  ;;  %v907_v31 = vadd.f32 %v906_v12, %v467_v54  ;;  %v908_v34 = vpop.f32.mrb[5].mxu1 }
 0x522   :  { %v1007_v6 = vpop.eup %1006  ;;  %v538_v5 = vadd.f32 0.5, %v534_v56  ;;  %v536_v4 = vmul.f32 0.5, %v1005_v13  ;;  %v909_v8 = vadd.f32 %v908_v34, %v467_v54  ;;  %v910_v9 = vpop.f32.mrb[6].mxu1 }
 0x523   :  { %v539_v15 = vadd.f32 0.5, %v535_v32  ;;  %v537_v16 = vmul.f32 0.5, %v1007_v6  ;;  %v915_v21 = vmul.f32 0.5, %v907_v31  ;;  %v911_v36 = vadd.f32 %v910_v9, %v472_v43  ;;  %v912_v24 = vpop.f32.mrb[7].mxu1 }
 0x524   :  { %v542_v22 = vmul.f32 %v538_v5, %v518_v62  ;;  %v540_v33 = vadd.f32 0.5, %v536_v4  ;;  %v916_v44 = vmul.f32 0.5, %v909_v8  ;;  %v913_v23 = vadd.f32 %v912_v24, %v472_v43 }
 0x525   :  { %v543_v48 = vmul.f32 %v539_v15, %v520_v10  ;;  %v541_v27 = vadd.f32 0.5, %v537_v16  ;;  %1008 = vtanh.f32 %v915_v21  ;;  %v917_v19 = vmul.f32 0.5, %v911_v36 }
 0x526   :  { %546 = vst [vmem:[#allocation7] sm:$0xff] %v542_v22  ;;  %v544_v20 = vmul.f32 %v540_v33, %v522_v53  ;;  %1010 = vtanh.f32 %v916_v44  ;;  %v918_v28 = vmul.f32 0.5, %v913_v23 }
 0x527   :  { %547 = vst [vmem:[#allocation7 + $0x8] sm:$0xff] %v543_v48  ;;  %v545_v25 = vmul.f32 %v541_v27, %v524_v1  ;;  %1012 = vtanh.f32 %v917_v19 }
 0x528   :  { %548 = vst [vmem:[#allocation7 + $0x10] sm:$0xff] %v544_v20  ;;  %1014 = vtanh.f32 %v918_v28 }
 0x529   :  { %549 = vst [vmem:[#allocation7 + $0x18] sm:$0xff] %v545_v25 }
 0x52f   :  { %v1009_v26 = vpop.eup %1008 }
 0x530   :  { %v1011_v29 = vpop.eup %1010  ;;  %v923_v30 = vmul.f32 0.5, %v1009_v26 }
 0x531   :  { %v1013_v39 = vpop.eup %1012  ;;  %v924_v40 = vmul.f32 0.5, %v1011_v29 }
 0x532   :  { %v1015_v57 = vpop.eup %1014  ;;  %v927_v41 = vadd.f32 0.5, %v923_v30  ;;  %v925_v3 = vmul.f32 0.5, %v1013_v39 }
 0x533   :  { %v928_v37 = vadd.f32 0.5, %v924_v40  ;;  %v926_v38 = vmul.f32 0.5, %v1015_v57 }
 0x534   :  { %v931_v58 = vmul.f32 %v927_v41, %v907_v31  ;;  %v929_v11 = vadd.f32 0.5, %v925_v3 }
 0x535   :  { %v932_v45 = vmul.f32 %v928_v37, %v909_v8  ;;  %v930_v59 = vadd.f32 0.5, %v926_v38 }
 0x536   :  { %936 = vst [vmem:[#allocation7 + $0x20] sm:$0xff] %v931_v58  ;;  %v933_v49 = vmul.f32 %v929_v11, %v911_v36 }
 0x537   :  { %937 = vst [vmem:[#allocation7 + $0x28] sm:$0xff] %v932_v45  ;;  %v934_v0 = vmul.f32 %v930_v59, %v913_v23 }
 0x538   :  { %938 = vst [vmem:[#allocation7 + $0x30] sm:$0xff] %v933_v49 }
 0x539   :  { %939 = vst [vmem:[#allocation7 + $0x38] sm:$0xff] %v934_v0 }
 0x53a   :  { %1071 = shalt.err (!%p1068_p6)
}
 0x53b   :  { %s1072_s19 = scalar_lea.hbm %s1865_s6, 1024 }
 0x53c   :  { %p1073_p7 = scmp.ne.s32.totalorder %s1865_s6, %s1072_s19  ;;  %p1076_p8 = scmp.lt.u32.totalorder %s1072_s19, %s1865_s6 }
 0x53e   :  { %p1078_p9 = pnand %p1076_p8, %p1073_p7 }
 0x540   :  { %1081 = shalt.err (!%p1078_p9)
}
 0x541   :  { %s1102_s25 = smov 256  }
 0x542   :  { %951 = dma.vmem_to_hbm [thread:$0]  %s946_s16, 1024, %s1865_s6, [#allocation4], %s1102_s25, %s1102_s25, %s1098_s9  }
 0x543   :  { %1086 = dma.done.wait [#allocation4], 1024  }
 0x544   :  { %1087 = vsyncadd [#allocation4], 4294966272 }
 0x545   :  { %955 = vsyncpa [#allocation3], 1 }
 0x546   :  { %956 = vsyncpa [#allocation6], 1 }
 0x547   :  { %957 = vsyncpa [#allocation4], 1 }

</bundles_post_ra>
